<compile_context>
chip_gen: v6e
topology: v6e:2x2x1
jax: 0.10.0
libtpu: 0.0.40
codegen_flags: <defaults>
</compile_context>

<pallas_src>
import functools

import jax
import jax.numpy as jnp
from jax.experimental import pallas as pl
from jax.experimental.pallas import tpu as pltpu


def _round_up(x, m):
    return ((x + m - 1) // m) * m


def lstm_last_linear_kernel(x_ref, w_in_ref, b_ref, w_hh_ref, wout_ref, bout_ref,
                            out_ref, pre_sc):
    """x_ref:    (T*Bp, F)    time-major, batch-padded input (row t*Bp + b)
       w_in_ref: (F, 4Hp)     input weight, gate-blocked by Hp  [i|f|g|o]
       b_ref:    (1, 4Hp)     fused b_ih + b_hh, gate-blocked
       w_hh_ref: (Hp, 4Hp)    recurrent weight, gate-blocked
       wout_ref: (Hp, Op)     padded output projection
       bout_ref: (1, Op)      padded output bias
       out_ref:  (Bp, Op)     lane-dense padded output
       pre_sc:   (T*Bp, 4Hp)  VMEM scratch holding the hoisted input projection"""
    Bp, _ = out_ref.shape
    TB, _ = x_ref.shape
    T = TB // Bp
    Hp = w_hh_ref.shape[0]
    prec = jax.lax.Precision.DEFAULT  # single bf16 MXU pass; HIGHEST for f32 parity

    # One-shot input projection (+ fused bias) for every timestep: a single
    # M=T*Bp MXU push that sits OFF the serial recurrence chain.
    pre_sc[...] = (jnp.dot(x_ref[...], w_in_ref[...],
                           precision=prec, preferred_element_type=jnp.float32)
                   + b_ref[...])

    def gate_nl(gates):
        i = jax.nn.sigmoid(gates[:, 0 * Hp:1 * Hp])
        f = jax.nn.sigmoid(gates[:, 1 * Hp:2 * Hp])
        g = jnp.tanh(gates[:, 2 * Hp:3 * Hp])
        o = jax.nn.sigmoid(gates[:, 3 * Hp:4 * Hp])
        return i, f, g, o

    # Peeled t = 0: h0 = c0 = 0, so no recurrent matmul and f*c vanishes.
    i, f, g, o = gate_nl(pre_sc[0:Bp, :])
    c = i * g
    h = o * jnp.tanh(c)

    # t = 1..T-1: gates = pre[t] + h @ W_hh  (one (Bp,Hp)x(Hp,4Hp) push per step).
    # TODO(synk): pin W_hh in the MXU via pltpu.matmul_push_rhs/acc_lhs/pop so the
    # (Hp,4Hp) weight is not re-pushed every step (largest relative win on v5e).
    for t in range(1, T):
        rec = jnp.dot(h, w_hh_ref[...], precision=prec,
                      preferred_element_type=jnp.float32)
        i, f, g, o = gate_nl(pre_sc[t * Bp:(t + 1) * Bp, :] + rec)
        c = f * c + i * g
        h = o * jnp.tanh(c)

    # Fused final Linear on the last hidden state (lane-dense padded store).
    out_ref[...] = (jnp.dot(h, wout_ref[...], precision=prec,
                            preferred_element_type=jnp.float32)
                    + bout_ref[...]).astype(out_ref.dtype)


@functools.partial(jax.jit, static_argnums=(6,))
def _forward(state, w_in_p, b_p, w_hh_p, wout_p, bout_p, outputs):
    B, T, F = state.shape
    Bp = _round_up(max(B, 8), 8)
    Hp = w_hh_p.shape[0]
    Op = wout_p.shape[1]

    # Minimal wrapper staging: time-major transpose + batch pad + free reshape.
    x_tm = jnp.transpose(state.astype(jnp.float32), (1, 0, 2))          # (T, B, F)
    x_pad = jax.lax.pad(x_tm, jnp.float32(0.0),
                        ((0, 0, 0), (0, Bp - B, 0), (0, 0, 0)))          # (T, Bp, F)
    x2d = x_pad.reshape(T * Bp, F)                                       # (T*Bp, F)

    vmem = pltpu.MemorySpace.VMEM
    out_p = pl.pallas_call(
        lstm_last_linear_kernel,
        out_shape=jax.ShapeDtypeStruct((Bp, Op), jnp.float32),
        in_specs=[pl.BlockSpec(memory_space=vmem)] * 6,
        out_specs=pl.BlockSpec(memory_space=vmem),
        scratch_shapes=[pltpu.VMEM((T * Bp, 4 * Hp), jnp.float32)],
    )(x2d, w_in_p, b_p, w_hh_p, wout_p, bout_p)

    return out_p[:B, :outputs]


def model_dqn_seq_forward(state, packed):
    """state: (B, T, F) float32 — same as the PyTorch batch_first LSTM input."""
    return _forward(state, packed["w_in_p"], packed["b_p"], packed["w_hh_p"],
                    packed["wout_p"], packed["bout_p"], packed["outputs"])


def init_params(key, feat, hidden, outputs):
    """Raw params mirroring PyTorch: LSTM U(-1/sqrt(H), 1/sqrt(H));
    output Linear xavier_uniform weight, zero bias."""
    k1, k2, k3, k4, k5 = jax.random.split(key, 5)
    bound = 1.0 / (hidden ** 0.5)
    w_ih = jax.random.uniform(k1, (4 * hidden, feat), jnp.float32, -bound, bound)
    w_hh = jax.random.uniform(k2, (4 * hidden, hidden), jnp.float32, -bound, bound)
    b_ih = jax.random.uniform(k3, (4 * hidden,), jnp.float32, -bound, bound)
    b_hh = jax.random.uniform(k4, (4 * hidden,), jnp.float32, -bound, bound)
    xav = (6.0 / (hidden + outputs)) ** 0.5
    w_out = jax.random.uniform(k5, (outputs, hidden), jnp.float32, -xav, xav)
    b_out = jnp.zeros((outputs,), jnp.float32)
    return {"w_ih": w_ih, "w_hh": w_hh, "b_ih": b_ih, "b_hh": b_hh,
            "w_out": w_out, "b_out": b_out}


def pack_params(raw, feat, hidden, outputs):
    """One-time re-layout/padding of the PyTorch-shaped params for the kernel.

    Each gate block is widened from H to Hp=128 columns; the padded hidden
    units are exactly inert (zero weights + zero bias -> pre-act 0 -> g=0 ->
    c=h=0 forever)."""
    H = hidden
    Hp = _round_up(H, 128)
    Op = _round_up(outputs, 128)

    w_ih_t = raw["w_ih"].T                 # (F, 4H), gate blocks [i|f|g|o]
    w_hh_t = raw["w_hh"].T                 # (H, 4H)
    b = raw["b_ih"] + raw["b_hh"]          # (4H,)

    w_in_p = jnp.zeros((feat, 4 * Hp), jnp.float32)
    b_p = jnp.zeros((1, 4 * Hp), jnp.float32)
    w_hh_p = jnp.zeros((Hp, 4 * Hp), jnp.float32)
    for g in range(4):
        w_in_p = w_in_p.at[:, g * Hp:g * Hp + H].set(w_ih_t[:, g * H:(g + 1) * H])
        b_p = b_p.at[0, g * Hp:g * Hp + H].set(b[g * H:(g + 1) * H])
        w_hh_p = w_hh_p.at[:H, g * Hp:g * Hp + H].set(w_hh_t[:, g * H:(g + 1) * H])

    wout_p = jnp.zeros((Hp, Op), jnp.float32).at[:H, :outputs].set(raw["w_out"].T)
    bout_p = jnp.zeros((1, Op), jnp.float32).at[0, :outputs].set(raw["b_out"])

    return {"w_in_p": w_in_p, "b_p": b_p, "w_hh_p": w_hh_p,
            "wout_p": wout_p, "bout_p": bout_p, "outputs": outputs}


def reference_forward(state, raw):
    """Pure-JAX reference (lax.scan LSTM) for validation."""
    B, T, F = state.shape
    H = raw["w_hh"].shape[1]
    w_ih_t, w_hh_t = raw["w_ih"].T, raw["w_hh"].T
    b = (raw["b_ih"] + raw["b_hh"])[None, :]

    def step(carry, x_t):
        h, c = carry
        gates = x_t @ w_ih_t + h @ w_hh_t + b
        i = jax.nn.sigmoid(gates[:, 0 * H:1 * H])
        f = jax.nn.sigmoid(gates[:, 1 * H:2 * H])
        g = jnp.tanh(gates[:, 2 * H:3 * H])
        o = jax.nn.sigmoid(gates[:, 3 * H:4 * H])
        c = f * c + i * g
        h = o * jnp.tanh(c)
        return (h, c), None

    h0 = jnp.zeros((B, H), jnp.float32)
    (h_last, _), _ = jax.lax.scan(step, (h0, h0), jnp.transpose(state, (1, 0, 2)))
    return h_last @ raw["w_out"].T + raw["b_out"][None, :]


if __name__ == "__main__":
    B, T, F = 2, 8, 16          # input_shape = (T, F) in the PyTorch ctor
    H, O = 64, 4                # LSTM hidden = 64, outputs_count = 4

    key = jax.random.PRNGKey(0)
    k_x, k_p = jax.random.split(key)
    state = jax.random.normal(k_x, (B, T, F), jnp.float32)

    raw = init_params(k_p, F, H, O)
    packed = pack_params(raw, F, H, O)

    out = model_dqn_seq_forward(state, packed)
    out = jax.block_until_ready(out)

    ref = reference_forward(state, raw)
    assert out.shape == (B, O)
    assert jnp.allclose(out, ref, atol=1e-3, rtol=1e-3), "mismatch vs JAX reference"

    print("KERNEL_OK")
</pallas_src>

<mosaic_0001>
module attributes {stable_mosaic.version = 11 : i64} {
  func.func @lstm_last_linear_kernel(%arg0: memref<64x16xf32, #tpu.memory_space<vmem>>, %arg1: memref<16x512xf32, #tpu.memory_space<vmem>>, %arg2: memref<1x512xf32, #tpu.memory_space<vmem>>, %arg3: memref<128x512xf32, #tpu.memory_space<vmem>>, %arg4: memref<128x128xf32, #tpu.memory_space<vmem>>, %arg5: memref<1x128xf32, #tpu.memory_space<vmem>>, %arg6: memref<8x128xf32, #tpu.memory_space<vmem>>, %arg7: memref<64x512xf32, #tpu.memory_space<vmem>>) attributes {dimension_semantics = [], scalar_prefetch = 0 : i64, scratch_operands = 1 : i64, tpu.core_type = #tpu.core_type<tc>} {
    %c0 = arith.constant 0 : index
    %c0_0 = arith.constant 0 : index
    %0 = vector.load %arg0[%c0, %c0_0] : memref<64x16xf32, #tpu.memory_space<vmem>>, vector<64x16xf32>
    %c0_1 = arith.constant 0 : index
    %c0_2 = arith.constant 0 : index
    %1 = vector.load %arg1[%c0_1, %c0_2] : memref<16x512xf32, #tpu.memory_space<vmem>>, vector<16x512xf32>
    %cst = arith.constant dense<0.000000e+00> : vector<64x512xf32>
    %2 = tpu.matmul %0, %1, %cst {dimension_numbers = #tpu.dot_dimension_numbers<[1], [0], [0], [1], [0, 0, 1, 1], [], []>} : vector<64x16xf32>, vector<16x512xf32>, vector<64x512xf32> -> vector<64x512xf32>
    %c0_3 = arith.constant 0 : index
    %c0_4 = arith.constant 0 : index
    %3 = vector.load %arg2[%c0_3, %c0_4] : memref<1x512xf32, #tpu.memory_space<vmem>>, vector<1x512xf32>
    %4 = vector.broadcast %3 : vector<1x512xf32> to vector<64x512xf32>
    %5 = arith.addf %2, %4 : vector<64x512xf32>
    %c0_5 = arith.constant 0 : index
    %c0_6 = arith.constant 0 : index
    %6 = vector.load %arg7[%c0_5, %c0_6] : memref<64x512xf32, #tpu.memory_space<vmem>>, vector<64x512xf32>
    tpu.vector_store %arg7[%c0_5, %c0_6], %5 {strides = array<i32>} : memref<64x512xf32, #tpu.memory_space<vmem>>, vector<64x512xf32>,
    %c0_7 = arith.constant 0 : index
    %c0_8 = arith.constant 0 : index
    %7 = vector.load %arg7[%c0_7, %c0_8] : memref<64x512xf32, #tpu.memory_space<vmem>>, vector<8x512xf32>
    %8 = vector.extract_strided_slice %7 {offsets = [0, 0], sizes = [8, 128], strides = [1, 1]} : vector<8x512xf32> to vector<8x128xf32>
    %9 = arith.negf %8 : vector<8x128xf32>
    %10 = math.exp %9 : vector<8x128xf32>
    %cst_9 = arith.constant 1.000000e+00 : f32
    %11 = vector.broadcast %cst_9 : f32 to vector<8x128xf32>
    %12 = arith.addf %11, %10 : vector<8x128xf32>
    %13 = arith.divf %11, %12 : vector<8x128xf32>
    %14 = vector.extract_strided_slice %7 {offsets = [0, 256], sizes = [8, 128], strides = [1, 1]} : vector<8x512xf32> to vector<8x128xf32>
    %15 = math.tanh %14 : vector<8x128xf32>
    %16 = vector.extract_strided_slice %7 {offsets = [0, 384], sizes = [8, 128], strides = [1, 1]} : vector<8x512xf32> to vector<8x128xf32>
    %17 = arith.negf %16 : vector<8x128xf32>
    %18 = math.exp %17 : vector<8x128xf32>
    %cst_10 = arith.constant 1.000000e+00 : f32
    %19 = vector.broadcast %cst_10 : f32 to vector<8x128xf32>
    %20 = arith.addf %19, %18 : vector<8x128xf32>
    %21 = arith.divf %19, %20 : vector<8x128xf32>
    %22 = arith.mulf %13, %15 : vector<8x128xf32>
    %23 = math.tanh %22 : vector<8x128xf32>
    %24 = arith.mulf %21, %23 : vector<8x128xf32>
    %c0_11 = arith.constant 0 : index
    %c0_12 = arith.constant 0 : index
    %25 = vector.load %arg3[%c0_11, %c0_12] : memref<128x512xf32, #tpu.memory_space<vmem>>, vector<128x512xf32>
    %cst_13 = arith.constant dense<0.000000e+00> : vector<8x512xf32>
    %26 = tpu.matmul %24, %25, %cst_13 {dimension_numbers = #tpu.dot_dimension_numbers<[1], [0], [0], [1], [0, 0, 1, 1], [], []>} : vector<8x128xf32>, vector<128x512xf32>, vector<8x512xf32> -> vector<8x512xf32>
    %c8 = arith.constant 8 : index
    %c0_14 = arith.constant 0 : index
    %27 = vector.load %arg7[%c8, %c0_14] : memref<64x512xf32, #tpu.memory_space<vmem>>, vector<8x512xf32>
    %28 = arith.addf %27, %26 : vector<8x512xf32>
    %29 = vector.extract_strided_slice %28 {offsets = [0, 0], sizes = [8, 128], strides = [1, 1]} : vector<8x512xf32> to vector<8x128xf32>
    %30 = arith.negf %29 : vector<8x128xf32>
    %31 = math.exp %30 : vector<8x128xf32>
    %cst_15 = arith.constant 1.000000e+00 : f32
    %32 = vector.broadcast %cst_15 : f32 to vector<8x128xf32>
    %33 = arith.addf %32, %31 : vector<8x128xf32>
    %34 = arith.divf %32, %33 : vector<8x128xf32>
    %35 = vector.extract_strided_slice %28 {offsets = [0, 128], sizes = [8, 128], strides = [1, 1]} : vector<8x512xf32> to vector<8x128xf32>
    %36 = arith.negf %35 : vector<8x128xf32>
    %37 = math.exp %36 : vector<8x128xf32>
    %cst_16 = arith.constant 1.000000e+00 : f32
    %38 = vector.broadcast %cst_16 : f32 to vector<8x128xf32>
    %39 = arith.addf %38, %37 : vector<8x128xf32>
    %40 = arith.divf %38, %39 : vector<8x128xf32>
    %41 = vector.extract_strided_slice %28 {offsets = [0, 256], sizes = [8, 128], strides = [1, 1]} : vector<8x512xf32> to vector<8x128xf32>
    %42 = math.tanh %41 : vector<8x128xf32>
    %43 = vector.extract_strided_slice %28 {offsets = [0, 384], sizes = [8, 128], strides = [1, 1]} : vector<8x512xf32> to vector<8x128xf32>
    %44 = arith.negf %43 : vector<8x128xf32>
    %45 = math.exp %44 : vector<8x128xf32>
    %cst_17 = arith.constant 1.000000e+00 : f32
    %46 = vector.broadcast %cst_17 : f32 to vector<8x128xf32>
    %47 = arith.addf %46, %45 : vector<8x128xf32>
    %48 = arith.divf %46, %47 : vector<8x128xf32>
    %49 = arith.mulf %40, %22 : vector<8x128xf32>
    %50 = arith.mulf %34, %42 : vector<8x128xf32>
    %51 = arith.addf %49, %50 : vector<8x128xf32>
    %52 = math.tanh %51 : vector<8x128xf32>
    %53 = arith.mulf %48, %52 : vector<8x128xf32>
    %c0_18 = arith.constant 0 : index
    %c0_19 = arith.constant 0 : index
    %54 = vector.load %arg3[%c0_18, %c0_19] : memref<128x512xf32, #tpu.memory_space<vmem>>, vector<128x512xf32>
    %cst_20 = arith.constant dense<0.000000e+00> : vector<8x512xf32>
    %55 = tpu.matmul %53, %54, %cst_20 {dimension_numbers = #tpu.dot_dimension_numbers<[1], [0], [0], [1], [0, 0, 1, 1], [], []>} : vector<8x128xf32>, vector<128x512xf32>, vector<8x512xf32> -> vector<8x512xf32>
    %c16 = arith.constant 16 : index
    %c0_21 = arith.constant 0 : index
    %56 = vector.load %arg7[%c16, %c0_21] : memref<64x512xf32, #tpu.memory_space<vmem>>, vector<8x512xf32>
    %57 = arith.addf %56, %55 : vector<8x512xf32>
    %58 = vector.extract_strided_slice %57 {offsets = [0, 0], sizes = [8, 128], strides = [1, 1]} : vector<8x512xf32> to vector<8x128xf32>
    %59 = arith.negf %58 : vector<8x128xf32>
    %60 = math.exp %59 : vector<8x128xf32>
    %cst_22 = arith.constant 1.000000e+00 : f32
    %61 = vector.broadcast %cst_22 : f32 to vector<8x128xf32>
    %62 = arith.addf %61, %60 : vector<8x128xf32>
    %63 = arith.divf %61, %62 : vector<8x128xf32>
    %64 = vector.extract_strided_slice %57 {offsets = [0, 128], sizes = [8, 128], strides = [1, 1]} : vector<8x512xf32> to vector<8x128xf32>
    %65 = arith.negf %64 : vector<8x128xf32>
    %66 = math.exp %65 : vector<8x128xf32>
    %cst_23 = arith.constant 1.000000e+00 : f32
    %67 = vector.broadcast %cst_23 : f32 to vector<8x128xf32>
    %68 = arith.addf %67, %66 : vector<8x128xf32>
    %69 = arith.divf %67, %68 : vector<8x128xf32>
    %70 = vector.extract_strided_slice %57 {offsets = [0, 256], sizes = [8, 128], strides = [1, 1]} : vector<8x512xf32> to vector<8x128xf32>
    %71 = math.tanh %70 : vector<8x128xf32>
    %72 = vector.extract_strided_slice %57 {offsets = [0, 384], sizes = [8, 128], strides = [1, 1]} : vector<8x512xf32> to vector<8x128xf32>
    %73 = arith.negf %72 : vector<8x128xf32>
    %74 = math.exp %73 : vector<8x128xf32>
    %cst_24 = arith.constant 1.000000e+00 : f32
    %75 = vector.broadcast %cst_24 : f32 to vector<8x128xf32>
    %76 = arith.addf %75, %74 : vector<8x128xf32>
    %77 = arith.divf %75, %76 : vector<8x128xf32>
    %78 = arith.mulf %69, %51 : vector<8x128xf32>
    %79 = arith.mulf %63, %71 : vector<8x128xf32>
    %80 = arith.addf %78, %79 : vector<8x128xf32>
    %81 = math.tanh %80 : vector<8x128xf32>
    %82 = arith.mulf %77, %81 : vector<8x128xf32>
    %c0_25 = arith.constant 0 : index
    %c0_26 = arith.constant 0 : index
    %83 = vector.load %arg3[%c0_25, %c0_26] : memref<128x512xf32, #tpu.memory_space<vmem>>, vector<128x512xf32>
    %cst_27 = arith.constant dense<0.000000e+00> : vector<8x512xf32>
    %84 = tpu.matmul %82, %83, %cst_27 {dimension_numbers = #tpu.dot_dimension_numbers<[1], [0], [0], [1], [0, 0, 1, 1], [], []>} : vector<8x128xf32>, vector<128x512xf32>, vector<8x512xf32> -> vector<8x512xf32>
    %c24 = arith.constant 24 : index
    %c0_28 = arith.constant 0 : index
    %85 = vector.load %arg7[%c24, %c0_28] : memref<64x512xf32, #tpu.memory_space<vmem>>, vector<8x512xf32>
    %86 = arith.addf %85, %84 : vector<8x512xf32>
    %87 = vector.extract_strided_slice %86 {offsets = [0, 0], sizes = [8, 128], strides = [1, 1]} : vector<8x512xf32> to vector<8x128xf32>
    %88 = arith.negf %87 : vector<8x128xf32>
    %89 = math.exp %88 : vector<8x128xf32>
    %cst_29 = arith.constant 1.000000e+00 : f32
    %90 = vector.broadcast %cst_29 : f32 to vector<8x128xf32>
    %91 = arith.addf %90, %89 : vector<8x128xf32>
    %92 = arith.divf %90, %91 : vector<8x128xf32>
    %93 = vector.extract_strided_slice %86 {offsets = [0, 128], sizes = [8, 128], strides = [1, 1]} : vector<8x512xf32> to vector<8x128xf32>
    %94 = arith.negf %93 : vector<8x128xf32>
    %95 = math.exp %94 : vector<8x128xf32>
    %cst_30 = arith.constant 1.000000e+00 : f32
    %96 = vector.broadcast %cst_30 : f32 to vector<8x128xf32>
    %97 = arith.addf %96, %95 : vector<8x128xf32>
    %98 = arith.divf %96, %97 : vector<8x128xf32>
    %99 = vector.extract_strided_slice %86 {offsets = [0, 256], sizes = [8, 128], strides = [1, 1]} : vector<8x512xf32> to vector<8x128xf32>
    %100 = math.tanh %99 : vector<8x128xf32>
    %101 = vector.extract_strided_slice %86 {offsets = [0, 384], sizes = [8, 128], strides = [1, 1]} : vector<8x512xf32> to vector<8x128xf32>
    %102 = arith.negf %101 : vector<8x128xf32>
    %103 = math.exp %102 : vector<8x128xf32>
    %cst_31 = arith.constant 1.000000e+00 : f32
    %104 = vector.broadcast %cst_31 : f32 to vector<8x128xf32>
    %105 = arith.addf %104, %103 : vector<8x128xf32>
    %106 = arith.divf %104, %105 : vector<8x128xf32>
    %107 = arith.mulf %98, %80 : vector<8x128xf32>
    %108 = arith.mulf %92, %100 : vector<8x128xf32>
    %109 = arith.addf %107, %108 : vector<8x128xf32>
    %110 = math.tanh %109 : vector<8x128xf32>
    %111 = arith.mulf %106, %110 : vector<8x128xf32>
    %c0_32 = arith.constant 0 : index
    %c0_33 = arith.constant 0 : index
    %112 = vector.load %arg3[%c0_32, %c0_33] : memref<128x512xf32, #tpu.memory_space<vmem>>, vector<128x512xf32>
    %cst_34 = arith.constant dense<0.000000e+00> : vector<8x512xf32>
    %113 = tpu.matmul %111, %112, %cst_34 {dimension_numbers = #tpu.dot_dimension_numbers<[1], [0], [0], [1], [0, 0, 1, 1], [], []>} : vector<8x128xf32>, vector<128x512xf32>, vector<8x512xf32> -> vector<8x512xf32>
    %c32 = arith.constant 32 : index
    %c0_35 = arith.constant 0 : index
    %114 = vector.load %arg7[%c32, %c0_35] : memref<64x512xf32, #tpu.memory_space<vmem>>, vector<8x512xf32>
    %115 = arith.addf %114, %113 : vector<8x512xf32>
    %116 = vector.extract_strided_slice %115 {offsets = [0, 0], sizes = [8, 128], strides = [1, 1]} : vector<8x512xf32> to vector<8x128xf32>
    %117 = arith.negf %116 : vector<8x128xf32>
    %118 = math.exp %117 : vector<8x128xf32>
    %cst_36 = arith.constant 1.000000e+00 : f32
    %119 = vector.broadcast %cst_36 : f32 to vector<8x128xf32>
    %120 = arith.addf %119, %118 : vector<8x128xf32>
    %121 = arith.divf %119, %120 : vector<8x128xf32>
    %122 = vector.extract_strided_slice %115 {offsets = [0, 128], sizes = [8, 128], strides = [1, 1]} : vector<8x512xf32> to vector<8x128xf32>
    %123 = arith.negf %122 : vector<8x128xf32>
    %124 = math.exp %123 : vector<8x128xf32>
    %cst_37 = arith.constant 1.000000e+00 : f32
    %125 = vector.broadcast %cst_37 : f32 to vector<8x128xf32>
    %126 = arith.addf %125, %124 : vector<8x128xf32>
    %127 = arith.divf %125, %126 : vector<8x128xf32>
    %128 = vector.extract_strided_slice %115 {offsets = [0, 256], sizes = [8, 128], strides = [1, 1]} : vector<8x512xf32> to vector<8x128xf32>
    %129 = math.tanh %128 : vector<8x128xf32>
    %130 = vector.extract_strided_slice %115 {offsets = [0, 384], sizes = [8, 128], strides = [1, 1]} : vector<8x512xf32> to vector<8x128xf32>
    %131 = arith.negf %130 : vector<8x128xf32>
    %132 = math.exp %131 : vector<8x128xf32>
    %cst_38 = arith.constant 1.000000e+00 : f32
    %133 = vector.broadcast %cst_38 : f32 to vector<8x128xf32>
    %134 = arith.addf %133, %132 : vector<8x128xf32>
    %135 = arith.divf %133, %134 : vector<8x128xf32>
    %136 = arith.mulf %127, %109 : vector<8x128xf32>
    %137 = arith.mulf %121, %129 : vector<8x128xf32>
    %138 = arith.addf %136, %137 : vector<8x128xf32>
    %139 = math.tanh %138 : vector<8x128xf32>
    %140 = arith.mulf %135, %139 : vector<8x128xf32>
    %c0_39 = arith.constant 0 : index
    %c0_40 = arith.constant 0 : index
    %141 = vector.load %arg3[%c0_39, %c0_40] : memref<128x512xf32, #tpu.memory_space<vmem>>, vector<128x512xf32>
    %cst_41 = arith.constant dense<0.000000e+00> : vector<8x512xf32>
    %142 = tpu.matmul %140, %141, %cst_41 {dimension_numbers = #tpu.dot_dimension_numbers<[1], [0], [0], [1], [0, 0, 1, 1], [], []>} : vector<8x128xf32>, vector<128x512xf32>, vector<8x512xf32> -> vector<8x512xf32>
    %c40 = arith.constant 40 : index
    %c0_42 = arith.constant 0 : index
    %143 = vector.load %arg7[%c40, %c0_42] : memref<64x512xf32, #tpu.memory_space<vmem>>, vector<8x512xf32>
    %144 = arith.addf %143, %142 : vector<8x512xf32>
    %145 = vector.extract_strided_slice %144 {offsets = [0, 0], sizes = [8, 128], strides = [1, 1]} : vector<8x512xf32> to vector<8x128xf32>
    %146 = arith.negf %145 : vector<8x128xf32>
    %147 = math.exp %146 : vector<8x128xf32>
    %cst_43 = arith.constant 1.000000e+00 : f32
    %148 = vector.broadcast %cst_43 : f32 to vector<8x128xf32>
    %149 = arith.addf %148, %147 : vector<8x128xf32>
    %150 = arith.divf %148, %149 : vector<8x128xf32>
    %151 = vector.extract_strided_slice %144 {offsets = [0, 128], sizes = [8, 128], strides = [1, 1]} : vector<8x512xf32> to vector<8x128xf32>
    %152 = arith.negf %151 : vector<8x128xf32>
    %153 = math.exp %152 : vector<8x128xf32>
    %cst_44 = arith.constant 1.000000e+00 : f32
    %154 = vector.broadcast %cst_44 : f32 to vector<8x128xf32>
    %155 = arith.addf %154, %153 : vector<8x128xf32>
    %156 = arith.divf %154, %155 : vector<8x128xf32>
    %157 = vector.extract_strided_slice %144 {offsets = [0, 256], sizes = [8, 128], strides = [1, 1]} : vector<8x512xf32> to vector<8x128xf32>
    %158 = math.tanh %157 : vector<8x128xf32>
    %159 = vector.extract_strided_slice %144 {offsets = [0, 384], sizes = [8, 128], strides = [1, 1]} : vector<8x512xf32> to vector<8x128xf32>
    %160 = arith.negf %159 : vector<8x128xf32>
    %161 = math.exp %160 : vector<8x128xf32>
    %cst_45 = arith.constant 1.000000e+00 : f32
    %162 = vector.broadcast %cst_45 : f32 to vector<8x128xf32>
    %163 = arith.addf %162, %161 : vector<8x128xf32>
    %164 = arith.divf %162, %163 : vector<8x128xf32>
    %165 = arith.mulf %156, %138 : vector<8x128xf32>
    %166 = arith.mulf %150, %158 : vector<8x128xf32>
    %167 = arith.addf %165, %166 : vector<8x128xf32>
    %168 = math.tanh %167 : vector<8x128xf32>
    %169 = arith.mulf %164, %168 : vector<8x128xf32>
    %c0_46 = arith.constant 0 : index
    %c0_47 = arith.constant 0 : index
    %170 = vector.load %arg3[%c0_46, %c0_47] : memref<128x512xf32, #tpu.memory_space<vmem>>, vector<128x512xf32>
    %cst_48 = arith.constant dense<0.000000e+00> : vector<8x512xf32>
    %171 = tpu.matmul %169, %170, %cst_48 {dimension_numbers = #tpu.dot_dimension_numbers<[1], [0], [0], [1], [0, 0, 1, 1], [], []>} : vector<8x128xf32>, vector<128x512xf32>, vector<8x512xf32> -> vector<8x512xf32>
    %c48 = arith.constant 48 : index
    %c0_49 = arith.constant 0 : index
    %172 = vector.load %arg7[%c48, %c0_49] : memref<64x512xf32, #tpu.memory_space<vmem>>, vector<8x512xf32>
    %173 = arith.addf %172, %171 : vector<8x512xf32>
    %174 = vector.extract_strided_slice %173 {offsets = [0, 0], sizes = [8, 128], strides = [1, 1]} : vector<8x512xf32> to vector<8x128xf32>
    %175 = arith.negf %174 : vector<8x128xf32>
    %176 = math.exp %175 : vector<8x128xf32>
    %cst_50 = arith.constant 1.000000e+00 : f32
    %177 = vector.broadcast %cst_50 : f32 to vector<8x128xf32>
    %178 = arith.addf %177, %176 : vector<8x128xf32>
    %179 = arith.divf %177, %178 : vector<8x128xf32>
    %180 = vector.extract_strided_slice %173 {offsets = [0, 128], sizes = [8, 128], strides = [1, 1]} : vector<8x512xf32> to vector<8x128xf32>
    %181 = arith.negf %180 : vector<8x128xf32>
    %182 = math.exp %181 : vector<8x128xf32>
    %cst_51 = arith.constant 1.000000e+00 : f32
    %183 = vector.broadcast %cst_51 : f32 to vector<8x128xf32>
    %184 = arith.addf %183, %182 : vector<8x128xf32>
    %185 = arith.divf %183, %184 : vector<8x128xf32>
    %186 = vector.extract_strided_slice %173 {offsets = [0, 256], sizes = [8, 128], strides = [1, 1]} : vector<8x512xf32> to vector<8x128xf32>
    %187 = math.tanh %186 : vector<8x128xf32>
    %188 = vector.extract_strided_slice %173 {offsets = [0, 384], sizes = [8, 128], strides = [1, 1]} : vector<8x512xf32> to vector<8x128xf32>
    %189 = arith.negf %188 : vector<8x128xf32>
    %190 = math.exp %189 : vector<8x128xf32>
    %cst_52 = arith.constant 1.000000e+00 : f32
    %191 = vector.broadcast %cst_52 : f32 to vector<8x128xf32>
    %192 = arith.addf %191, %190 : vector<8x128xf32>
    %193 = arith.divf %191, %192 : vector<8x128xf32>
    %194 = arith.mulf %185, %167 : vector<8x128xf32>
    %195 = arith.mulf %179, %187 : vector<8x128xf32>
    %196 = arith.addf %194, %195 : vector<8x128xf32>
    %197 = math.tanh %196 : vector<8x128xf32>
    %198 = arith.mulf %193, %197 : vector<8x128xf32>
    %c0_53 = arith.constant 0 : index
    %c0_54 = arith.constant 0 : index
    %199 = vector.load %arg3[%c0_53, %c0_54] : memref<128x512xf32, #tpu.memory_space<vmem>>, vector<128x512xf32>
    %cst_55 = arith.constant dense<0.000000e+00> : vector<8x512xf32>
    %200 = tpu.matmul %198, %199, %cst_55 {dimension_numbers = #tpu.dot_dimension_numbers<[1], [0], [0], [1], [0, 0, 1, 1], [], []>} : vector<8x128xf32>, vector<128x512xf32>, vector<8x512xf32> -> vector<8x512xf32>
    %c56 = arith.constant 56 : index
    %c0_56 = arith.constant 0 : index
    %201 = vector.load %arg7[%c56, %c0_56] : memref<64x512xf32, #tpu.memory_space<vmem>>, vector<8x512xf32>
    %202 = arith.addf %201, %200 : vector<8x512xf32>
    %203 = vector.extract_strided_slice %202 {offsets = [0, 0], sizes = [8, 128], strides = [1, 1]} : vector<8x512xf32> to vector<8x128xf32>
    %204 = arith.negf %203 : vector<8x128xf32>
    %205 = math.exp %204 : vector<8x128xf32>
    %cst_57 = arith.constant 1.000000e+00 : f32
    %206 = vector.broadcast %cst_57 : f32 to vector<8x128xf32>
    %207 = arith.addf %206, %205 : vector<8x128xf32>
    %208 = arith.divf %206, %207 : vector<8x128xf32>
    %209 = vector.extract_strided_slice %202 {offsets = [0, 128], sizes = [8, 128], strides = [1, 1]} : vector<8x512xf32> to vector<8x128xf32>
    %210 = arith.negf %209 : vector<8x128xf32>
    %211 = math.exp %210 : vector<8x128xf32>
    %cst_58 = arith.constant 1.000000e+00 : f32
    %212 = vector.broadcast %cst_58 : f32 to vector<8x128xf32>
    %213 = arith.addf %212, %211 : vector<8x128xf32>
    %214 = arith.divf %212, %213 : vector<8x128xf32>
    %215 = vector.extract_strided_slice %202 {offsets = [0, 256], sizes = [8, 128], strides = [1, 1]} : vector<8x512xf32> to vector<8x128xf32>
    %216 = math.tanh %215 : vector<8x128xf32>
    %217 = vector.extract_strided_slice %202 {offsets = [0, 384], sizes = [8, 128], strides = [1, 1]} : vector<8x512xf32> to vector<8x128xf32>
    %218 = arith.negf %217 : vector<8x128xf32>
    %219 = math.exp %218 : vector<8x128xf32>
    %cst_59 = arith.constant 1.000000e+00 : f32
    %220 = vector.broadcast %cst_59 : f32 to vector<8x128xf32>
    %221 = arith.addf %220, %219 : vector<8x128xf32>
    %222 = arith.divf %220, %221 : vector<8x128xf32>
    %223 = arith.mulf %214, %196 : vector<8x128xf32>
    %224 = arith.mulf %208, %216 : vector<8x128xf32>
    %225 = arith.addf %223, %224 : vector<8x128xf32>
    %226 = math.tanh %225 : vector<8x128xf32>
    %227 = arith.mulf %222, %226 : vector<8x128xf32>
    %c0_60 = arith.constant 0 : index
    %c0_61 = arith.constant 0 : index
    %228 = vector.load %arg4[%c0_60, %c0_61] : memref<128x128xf32, #tpu.memory_space<vmem>>, vector<128x128xf32>
    %cst_62 = arith.constant dense<0.000000e+00> : vector<8x128xf32>
    %229 = tpu.matmul %227, %228, %cst_62 {dimension_numbers = #tpu.dot_dimension_numbers<[1], [0], [0], [1], [0, 0, 1, 1], [], []>} : vector<8x128xf32>, vector<128x128xf32>, vector<8x128xf32> -> vector<8x128xf32>
    %c0_63 = arith.constant 0 : index
    %c0_64 = arith.constant 0 : index
    %230 = vector.load %arg5[%c0_63, %c0_64] : memref<1x128xf32, #tpu.memory_space<vmem>>, vector<1x128xf32>
    %231 = vector.broadcast %230 : vector<1x128xf32> to vector<8x128xf32>
    %232 = arith.addf %229, %231 : vector<8x128xf32>
    %c0_65 = arith.constant 0 : index
    %c0_66 = arith.constant 0 : index
    %233 = vector.load %arg6[%c0_65, %c0_66] : memref<8x128xf32, #tpu.memory_space<vmem>>, vector<8x128xf32>
    tpu.vector_store %arg6[%c0_65, %c0_66], %232 {strides = array<i32>} : memref<8x128xf32, #tpu.memory_space<vmem>>, vector<8x128xf32>,
    return
  }
}

</mosaic_0001>

<bundles_post_ra>
// kernel: _forward.1
= control target key start
LH: loop header
LB: loop body
LE: loop exit
PB: predicated region body
PF: predicated region fallthrough
CT: control target
= control target key end

     0   :  { %11 = vsyncpa [#allocation4], 0  ;;  %s3129_s0 = inlined_call_operand.vmem [shape: f32[64,16], index: 0, kind: input, shape index: {}]   ;;  %s3130_s1 = inlined_call_operand.vmem [shape: f32[16,512], index: 1, kind: input, shape index: {}]   ;;  %s3131_s2 = inlined_call_operand.vmem [shape: f32[1,512], index: 2, kind: input, shape index: {}]   ;;  %s3132_s3 = inlined_call_operand.hbm [shape: f32[128,512], index: 3, kind: input, shape index: {}]   ;;  %s3133_s4 = inlined_call_operand.hbm [shape: f32[128,128], index: 4, kind: input, shape index: {}]   ;;  %s3134_s5 = inlined_call_operand.vmem [shape: f32[1,128], index: 5, kind: input, shape index: {}]   ;;  %s3135_s6 = inlined_call_operand.vmem [shape: f32[8,128], index: 6, kind: output, shape index: {}]  }
   0x1   :  { %12 = vsyncpa [#allocation6], 0  ;;  %s2105_s21 = smov [#allocation3]  }
   0x2   :  { %s24_s22 = sshll.u32 %s2105_s21, 4  ;;  %s25_s22 = int_to_ptr.vmem [resolvable:$true] %s24_s22 }
   0x3   :  { %s2069_s23 = scalar_lea.vmem %s25_s22, 8192  ;;  %p2074_p1 = scmp.lt.s32.totalorder %s25_s22, %s25_s22 }
   0x4   :  { %p2070_p0 = scmp.ne.s32.totalorder %s25_s22, %s2069_s23  ;;  %p2075_p2 = scmp.lt.s32.totalorder %s2069_s23, %s2069_s23 }
   0x6   :  { %p2076_p3 = por %p2075_p2, %p2074_p1 }
   0x8   :  { %p2077_p4 = pnand %p2076_p3, %p2070_p0 }
   0xa   :  { %2080 = shalt.err (!%p2077_p4)
}
   0xb   :  { %s2106_s24 = smov 512   ;;  %s2107_s25 = smov 32  }
   0xc   :  { %30 = dma.hbm_to_vmem [thread:$0]  %s3132_s3, 8192, %s25_s22, [#allocation4], %s2106_s24, %s2106_s24, %s2107_s25  }
   0xd   :  { %s2108_s28 = smov [#allocation5]  }
   0xe   :  { %s36_s29 = sshll.u32 %s2108_s28, 4  ;;  %s37_s29 = int_to_ptr.vmem [resolvable:$true] %s36_s29 }
   0xf   :  { %s2089_s30 = scalar_lea.vmem %s37_s29, 2048  ;;  %p2094_p6 = scmp.lt.s32.totalorder %s37_s29, %s37_s29 }
  0x10   :  { %p2090_p5 = scmp.ne.s32.totalorder %s37_s29, %s2089_s30  ;;  %p2095_p7 = scmp.lt.s32.totalorder %s2089_s30, %s2089_s30 }
  0x12   :  { %p2096_p8 = por %p2095_p7, %p2094_p6 }
  0x14   :  { %p2097_p9 = pnand %p2096_p8, %p2090_p5 }
  0x16   :  { %2100 = shalt.err (!%p2097_p9)
}
  0x17   :  { %s2109_s7 = smov 128   ;;  %s2110_s8 = smov 8  }
  0x18   :  { %42 = dma.hbm_to_vmem [thread:$0]  %s3133_s4, 2048, %s37_s29, [#allocation6], %s2109_s7, %s2109_s7, %s2110_s8  }
  0x19   :  { %2101 = dma.done.wait [#allocation4], 8192  }
  0x1a   :  { %2102 = vsyncadd [#allocation4], 4294959104 }
  0x1b   :  { %2103 = dma.done.wait [#allocation6], 2048  }
  0x1c   :  { %2104 = vsyncadd [#allocation6], 4294965248  ;;  %v3138_v0 = vmov 0.0   ;;  %v64_v1 = vld [vmem:[%s3130_s1 + $0x28] sm:$0xff]  ;;  %v63_v2 = vld [vmem:[%s3130_s1 + $0x20] sm:$0xff]  ;;  %vm89_vm0 = vcmask 130048  }
  0x1d   :  { %178 = vmatprep.mubr.f32.mxu0 %v3138_v0  ;;  %291 = vmatprep.mubr.f32.mxu1 %v3138_v0  ;;  %v60_v3 = vld [vmem:[%s3130_s1 + $0x8] sm:$0xff]  ;;  %v59_v4 = vld [vmem:[%s3130_s1] sm:$0xff]  ;;  %v66_v6 = vld [vmem:[%s3130_s1 + $0x38] sm:$0xff]  ;;  %vm2112_vm1 = vmmov 0  }
  0x1e   :  { %142 = vmatprep.subr.mxu0 %v64_v1  ;;  %v51_v5 = vld [vmem:[%s3129_s0] sm:$0xff]  ;;  %255 = vmatprep.subr.mxu1 %v66_v6  ;;  %v65_v7 = vld [vmem:[%s3130_s1 + $0x30] sm:$0xff]  ;;  %v62_v8 = vld [vmem:[%s3130_s1 + $0x18] sm:$0xff] }
  0x1f   :  { %143 = vmatpush1.msra.mxu0 %v63_v2  ;;  %v61_v9 = vld [vmem:[%s3130_s1 + $0x10] sm:$0xff]  ;;  %256 = vmatpush1.msra.mxu1 %v65_v7  ;;  %v2187_v10 = vld [vmem:[#allocation3 + $0x1e8] sm:$0xff]  ;;  %v2189_v11 = vld [vmem:[#allocation3 + $0x1f8] sm:$0xff] }
  0x20   :  { %144 = vmatprep.subr.mxu0 %v60_v3  ;;  %257 = vmatprep.subr.mxu1 %v62_v8  ;;  %3221 = vst [vmem:[#allocation9_spill] sm:$0xff] %v2187_v10  ;;  %3222 = vst [vmem:[#allocation10_spill] sm:$0xff] %v2189_v11  ;;  %v2192_v12 = vld [vmem:[#allocation3 + $0x1e0] sm:$0xff]  ;;  %v2195_v13 = vld [vmem:[#allocation3 + $0x1f0] sm:$0xff] }
  0x21   :  { %145 = vmatpush1.msra.mxu0 %v59_v4  ;;  %258 = vmatpush1.msra.mxu1 %v61_v9  ;;  %v2198_v14 = vld [vmem:[#allocation3 + $0x1c8] sm:$0xff]  ;;  %v2204_v16 = vld [vmem:[#allocation3 + $0x1d8] sm:$0xff]  ;;  %v2208_v17 = vld [vmem:[#allocation3 + $0x1c0] sm:$0xff] }
  0x22   :  { %1773 = vmatmul.mubr.msk.f32.vlgmr.msra.gmra.mxu0 %vm89_vm0, %v51_v5  ;;  %1781 = vmatmul.mubr.msk.f32.vlgmr.msra.gmra.mxu1 %vm89_vm0, %v51_v5  ;;  %v52_v15 = vld [vmem:[%s3129_s0 + $0x8] sm:$0xff]  ;;  %v2210_v18 = vld [vmem:[#allocation3 + $0x1d0] sm:$0xff]  ;;  %v2216_v20 = vld [vmem:[#allocation3 + $0x1b8] sm:$0xff] }
  0x23   :  { %184 = vmatprep.mubr.f32.mxu0 %v3138_v0  ;;  %297 = vmatprep.mubr.f32.mxu1 %v3138_v0  ;;  %v2214_v19 = vld [vmem:[#allocation3 + $0x1a8] sm:$0xff]  ;;  %v2220_v21 = vld [vmem:[#allocation3 + $0x1a0] sm:$0xff]  ;;  %v2222_v22 = vld [vmem:[#allocation3 + $0x1b0] sm:$0xff] }
  0x24   :  { %455 = vmatprep.subr.mxu0 %v2187_v10  ;;  %526 = vmatprep.subr.mxu1 %v2189_v11  ;;  %v2226_v23 = vld [vmem:[#allocation3 + $0x188] sm:$0xff]  ;;  %v53_v24 = vld [vmem:[%s3129_s0 + $0x10] sm:$0xff]  ;;  %v2231_v25 = vld [vmem:[#allocation3 + $0x198] sm:$0xff] }
  0x25   :  { %456 = vmatpush1.msra.mxu0 %v2192_v12  ;;  %527 = vmatpush1.msra.mxu1 %v2195_v13  ;;  %v2235_v26 = vld [vmem:[#allocation3 + $0x180] sm:$0xff]  ;;  %v2239_v27 = vld [vmem:[#allocation3 + $0x168] sm:$0xff]  ;;  %v2241_v28 = vld [vmem:[#allocation3 + $0x190] sm:$0xff] }
  0x26   :  { %457 = vmatprep.subr.mxu0 %v2198_v14  ;;  %1774 = vmatmul.mubr.msk.f32.gmra.mxu0 %vm89_vm0, %v52_v15  ;;  %v2245_v29 = vld [vmem:[#allocation3 + $0x160] sm:$0xff]  ;;  %v2249_v30 = vld [vmem:[#allocation3 + $0x178] sm:$0xff]  ;;  %v2253_v31 = vld [vmem:[#allocation3 + $0x148] sm:$0xff] }
  0x27   :  { %458 = vmatpush1.msra.mxu0 %v2208_v17  ;;  %528 = vmatprep.subr.mxu1 %v2204_v16  ;;  %v2255_v32 = vld [vmem:[#allocation3 + $0x170] sm:$0xff]  ;;  %v54_v33 = vld [vmem:[%s3129_s0 + $0x18] sm:$0xff]  ;;  %v2266_v35 = vld [vmem:[#allocation3 + $0x140] sm:$0xff] }
  0x28   :  { %459 = vmatprep.subr.mxu0 %v2214_v19  ;;  %529 = vmatpush1.msra.mxu1 %v2210_v18  ;;  %v2262_v34 = vld [vmem:[#allocation3 + $0x158] sm:$0xff]  ;;  %v2270_v36 = vld [vmem:[#allocation3 + $0x128] sm:$0xff]  ;;  %v2272_v37 = vld [vmem:[#allocation3 + $0x150] sm:$0xff] }
  0x29   :  { %1782 = vmatmul.mubr.msk.f32.gmra.mxu1 %vm89_vm0, %v52_v15  ;;  %460 = vmatpush1.msra.mxu0 %v2220_v21  ;;  %v2276_v38 = vld [vmem:[#allocation3 + $0x120] sm:$0xff]  ;;  %v2280_v39 = vld [vmem:[#allocation3 + $0x138] sm:$0xff]  ;;  %v2284_v40 = vld [vmem:[#allocation3 + $0x108] sm:$0xff] }
  0x2a   :  { %530 = vmatprep.subr.mxu1 %v2216_v20  ;;  %190 = vmatprep.mubr.f32.mxu0 %v3138_v0  ;;  %v2286_v41 = vld [vmem:[#allocation3 + $0x130] sm:$0xff]  ;;  %v55_v42 = vld [vmem:[%s3129_s0 + $0x20] sm:$0xff]  ;;  %v2293_v43 = vld [vmem:[#allocation3 + $0x118] sm:$0xff] }
  0x2b   :  { %461 = vmatprep.subr.mxu0 %v2226_v23  ;;  %531 = vmatpush1.msra.mxu1 %v2222_v22  ;;  %v2297_v44 = vld [vmem:[#allocation3 + $0x100] sm:$0xff]  ;;  %v2301_v45 = vld [vmem:[#allocation3 + $0xe8] sm:$0xff]  ;;  %v2303_v46 = vld [vmem:[#allocation3 + $0x110] sm:$0xff] }
  0x2c   :  { %1775 = vmatmul.mubr.msk.f32.gmra.mxu0 %vm89_vm0, %v53_v24  ;;  %532 = vmatprep.subr.mxu1 %v2231_v25  ;;  %v2307_v47 = vld [vmem:[#allocation3 + $0xe0] sm:$0xff]  ;;  %v2311_v48 = vld [vmem:[#allocation3 + $0xf8] sm:$0xff]  ;;  %v2315_v49 = vld [vmem:[#allocation3 + $0xc8] sm:$0xff] }
  0x2d   :  { %462 = vmatpush1.msra.mxu0 %v2235_v26  ;;  %303 = vmatprep.mubr.f32.mxu1 %v3138_v0  ;;  %v2317_v50 = vld [vmem:[#allocation3 + $0xf0] sm:$0xff]  ;;  %v56_v51 = vld [vmem:[%s3129_s0 + $0x28] sm:$0xff]  ;;  %v2324_v52 = vld [vmem:[#allocation3 + $0xd8] sm:$0xff] }
  0x2e   :  { %463 = vmatprep.subr.mxu0 %v2239_v27  ;;  %533 = vmatpush1.msra.mxu1 %v2241_v28  ;;  %v2328_v53 = vld [vmem:[#allocation3 + $0xc0] sm:$0xff]  ;;  %v2332_v54 = vld [vmem:[#allocation3 + $0xa8] sm:$0xff]  ;;  %v2334_v55 = vld [vmem:[#allocation3 + $0xd0] sm:$0xff] }
  0x2f   :  { %1783 = vmatmul.mubr.msk.f32.gmra.mxu1 %vm89_vm0, %v53_v24  ;;  %464 = vmatpush1.msra.mxu0 %v2245_v29  ;;  %v2338_v56 = vld [vmem:[#allocation3 + $0xa0] sm:$0xff]  ;;  %v2342_v57 = vld [vmem:[#allocation3 + $0xb8] sm:$0xff]  ;;  %v2346_v58 = vld [vmem:[#allocation3 + $0x88] sm:$0xff] }
  0x30   :  { %534 = vmatprep.subr.mxu1 %v2249_v30  ;;  %196 = vmatprep.mubr.f32.mxu0 %v3138_v0  ;;  %3223 = vst [vmem:[#allocation11_spill] sm:$0xff] %v2338_v56  ;;  %3224 = vst [vmem:[#allocation12_spill] sm:$0xff] %v2346_v58  ;;  %v2348_v59 = vld [vmem:[#allocation3 + $0xb0] sm:$0xff]  ;;  %v2355_v61 = vld [vmem:[#allocation3 + $0x98] sm:$0xff] }
  0x31   :  { %465 = vmatprep.subr.mxu0 %v2253_v31  ;;  %535 = vmatpush1.msra.mxu1 %v2255_v32  ;;  %3225 = vst [vmem:[#allocation13_spill] sm:$0xff] %v2348_v59  ;;  %v57_v60 = vld [vmem:[%s3129_s0 + $0x30] sm:$0xff]  ;;  %3226 = vst [vmem:[#allocation14_spill] sm:$0xff] %v2355_v61  ;;  %v2359_v62 = vld [vmem:[#allocation3 + $0x80] sm:$0xff] }
  0x32   :  { %1776 = vmatmul.mubr.msk.f32.gmra.mxu0 %vm89_vm0, %v54_v33  ;;  %536 = vmatprep.subr.mxu1 %v2262_v34  ;;  %3227 = vst [vmem:[#allocation15_spill] sm:$0xff] %v2359_v62  ;;  %v2363_v63 = vld [vmem:[#allocation3 + $0x68] sm:$0xff]  ;;  %v2365_v1 = vld [vmem:[#allocation3 + $0x90] sm:$0xff]  ;;  %v2369_v2 = vld [vmem:[#allocation3 + $0x60] sm:$0xff] }
  0x33   :  { %466 = vmatpush1.msra.mxu0 %v2266_v35  ;;  %309 = vmatprep.mubr.f32.mxu1 %v3138_v0  ;;  %3228 = vst [vmem:[#allocation16_spill] sm:$0xff] %v2363_v63  ;;  %3229 = vst [vmem:[#allocation17_spill] sm:$0xff] %v2365_v1  ;;  %v2373_v3 = vld [vmem:[#allocation3 + $0x78] sm:$0xff]  ;;  %v2377_v4 = vld [vmem:[#allocation3 + $0x48] sm:$0xff] }
  0x34   :  { %467 = vmatprep.subr.mxu0 %v2270_v36  ;;  %537 = vmatpush1.msra.mxu1 %v2272_v37  ;;  %3230 = vst [vmem:[#allocation18_spill] sm:$0xff] %v2369_v2  ;;  %3231 = vst [vmem:[#allocation19_spill] sm:$0xff] %v2373_v3  ;;  %v2379_v5 = vld [vmem:[#allocation3 + $0x70] sm:$0xff]  ;;  %v58_v6 = vld [vmem:[%s3129_s0 + $0x38] sm:$0xff] }
  0x35   :  { %1784 = vmatmul.mubr.msk.f32.gmra.mxu1 %vm89_vm0, %v54_v33  ;;  %468 = vmatpush1.msra.mxu0 %v2276_v38  ;;  %3232 = vst [vmem:[#allocation20_spill] sm:$0xff] %v2377_v4  ;;  %3233 = vst [vmem:[#allocation21_spill] sm:$0xff] %v2379_v5  ;;  %v2386_v7 = vld [vmem:[#allocation3 + $0x58] sm:$0xff]  ;;  %v2390_v8 = vld [vmem:[#allocation3 + $0x40] sm:$0xff] }
  0x36   :  { %538 = vmatprep.subr.mxu1 %v2280_v39  ;;  %202 = vmatprep.mubr.f32.mxu0 %v3138_v0  ;;  %3234 = vst [vmem:[#allocation22_spill] sm:$0xff] %v2386_v7  ;;  %3235 = vst [vmem:[#allocation23_spill] sm:$0xff] %v2390_v8  ;;  %v2394_v9 = vld [vmem:[#allocation3 + $0x28] sm:$0xff]  ;;  %v2396_v15 = vld [vmem:[#allocation3 + $0x50] sm:$0xff] }
  0x37   :  { %469 = vmatprep.subr.mxu0 %v2284_v40  ;;  %539 = vmatpush1.msra.mxu1 %v2286_v41  ;;  %3236 = vst [vmem:[#allocation24_spill] sm:$0xff] %v2394_v9  ;;  %3237 = vst [vmem:[#allocation25_spill] sm:$0xff] %v2396_v15  ;;  %v2400_v24 = vld [vmem:[#allocation3 + $0x20] sm:$0xff]  ;;  %v2404_v33 = vld [vmem:[#allocation3 + $0x38] sm:$0xff] }
  0x38   :  { %1777 = vmatmul.mubr.msk.f32.gmra.mxu0 %vm89_vm0, %v55_v42  ;;  %540 = vmatprep.subr.mxu1 %v2293_v43  ;;  %3238 = vst [vmem:[#allocation26_spill] sm:$0xff] %v2400_v24  ;;  %3239 = vst [vmem:[#allocation27_spill] sm:$0xff] %v2404_v33 }
  0x39   :  { %470 = vmatpush1.msra.mxu0 %v2297_v44  ;;  %315 = vmatprep.mubr.f32.mxu1 %v3138_v0 }
  0x3a   :  { %471 = vmatprep.subr.mxu0 %v2301_v45  ;;  %541 = vmatpush1.msra.mxu1 %v2303_v46 }
  0x3b   :  { %1785 = vmatmul.mubr.msk.f32.gmra.mxu1 %vm89_vm0, %v55_v42  ;;  %472 = vmatpush1.msra.mxu0 %v2307_v47  ;;  %v2406_v42 = vld [vmem:[#allocation3 + $0x8] sm:$0xff] }
  0x3c   :  { %542 = vmatprep.subr.mxu1 %v2311_v48  ;;  %208 = vmatprep.mubr.f32.mxu0 %v3138_v0  ;;  %3240 = vst [vmem:[#allocation28_spill] sm:$0xff] %v2406_v42 }
  0x3d   :  { %473 = vmatprep.subr.mxu0 %v2315_v49  ;;  %543 = vmatpush1.msra.mxu1 %v2317_v50 }
  0x3e   :  { %1778 = vmatmul.mubr.msk.f32.gmra.mxu0 %vm89_vm0, %v56_v51  ;;  %544 = vmatprep.subr.mxu1 %v2324_v52 }
  0x3f   :  { %474 = vmatpush1.msra.mxu0 %v2328_v53  ;;  %321 = vmatprep.mubr.f32.mxu1 %v3138_v0 }
  0x40   :  { %475 = vmatprep.subr.mxu0 %v2332_v54  ;;  %545 = vmatpush1.msra.mxu1 %v2334_v55 }
  0x41   :  { %1786 = vmatmul.mubr.msk.f32.gmra.mxu1 %vm89_vm0, %v56_v51  ;;  %476 = vmatpush1.msra.mxu0 %v2338_v56  ;;  %v2410_v51 = vld [vmem:[#allocation3 + $0x30] sm:$0xff] }
  0x42   :  { %546 = vmatprep.subr.mxu1 %v2342_v57  ;;  %214 = vmatprep.mubr.f32.mxu0 %v3138_v0  ;;  %3241 = vst [vmem:[#allocation29_spill] sm:$0xff] %v2410_v51 }
  0x43   :  { %477 = vmatprep.subr.mxu0 %v2346_v58  ;;  %547 = vmatpush1.msra.mxu1 %v2348_v59 }
  0x44   :  { %1779 = vmatmul.mubr.msk.f32.gmra.mxu0 %vm89_vm0, %v57_v60  ;;  %548 = vmatprep.subr.mxu1 %v2355_v61 }
  0x45   :  { %478 = vmatpush1.msra.mxu0 %v2359_v62  ;;  %327 = vmatprep.mubr.f32.mxu1 %v3138_v0 }
  0x46   :  { %479 = vmatprep.subr.mxu0 %v2363_v63  ;;  %549 = vmatpush1.msra.mxu1 %v2365_v1 }
  0x47   :  { %1787 = vmatmul.mubr.msk.f32.gmra.mxu1 %vm89_vm0, %v57_v60  ;;  %480 = vmatpush1.msra.mxu0 %v2369_v2  ;;  %v2412_v60 = vld [vmem:[#allocation3] sm:$0xff] }
  0x48   :  { %550 = vmatprep.subr.mxu1 %v2373_v3  ;;  %220 = vmatprep.mubr.f32.mxu0 %v3138_v0  ;;  %3242 = vst [vmem:[#allocation30_spill] sm:$0xff] %v2412_v60 }
  0x49   :  { %481 = vmatprep.subr.mxu0 %v2377_v4  ;;  %551 = vmatpush1.msra.mxu1 %v2379_v5 }
  0x4a   :  { %1780 = vmatmul.mubr.msk.f32.gmra.mxu0 %vm89_vm0, %v58_v6  ;;  %552 = vmatprep.subr.mxu1 %v2386_v7  ;;  %v2416_v7 = vld [vmem:[#allocation3 + $0x18] sm:$0xff] }
  0x4b   :  { %482 = vmatpush1.msra.mxu0 %v2390_v8  ;;  %333 = vmatprep.mubr.f32.mxu1 %v3138_v0  ;;  %3243 = vst [vmem:[#allocation31_spill] sm:$0xff] %v2416_v7  ;;  %v2420_v0 = vld [vmem:[#allocation3 + $0x10] sm:$0xff] }
  0x4c   :  { %483 = vmatprep.subr.mxu0 %v2394_v9  ;;  %553 = vmatpush1.msra.mxu1 %v2396_v15  ;;  %3244 = vst [vmem:[#allocation32_spill] sm:$0xff] %v2420_v0  ;;  %v3245_v9 = vmov 0.0  }
  0x4d   :  { %1788 = vmatmul.mubr.msk.f32.gmra.mxu1 %vm89_vm0, %v58_v6  ;;  %484 = vmatpush1.msra.mxu0 %v2400_v24  ;;  %v69_v6 = vlaneseq }
  0x4e   :  { %554 = vmatprep.subr.mxu1 %v2404_v33  ;;  %485 = vmatprep.subr.mxu0 %v2406_v42 }
  0x4f   :  { %555 = vmatpush1.msra.mxu1 %v2410_v51  ;;  %486 = vmatpush1.msra.mxu0 %v2412_v60  ;;  %v2430_v42 = vshrl.u32 %v69_v6, 7  ;;  %v2436_v60 = vld [vmem:[%s3131_s2] sm:$0xf] }
  0x50   :  { %556 = vmatprep.subr.mxu1 %v2416_v7  ;;  %519 = vmatprep.mubr.f32.mxu0 %v3245_v9 }
  0x51   :  { %557 = vmatpush1.msra.mxu1 %v2420_v0  ;;  %590 = vmatprep.mubr.f32.mxu1 %v3245_v9  ;;  %v71_v24 = vsub.s32 0, %v2430_v42  ;;  %v83_v9 = vsub.s32 3, %v2430_v42  ;;  %v79_v8 = vsub.s32 2, %v2430_v42 }
  0x52   :  { %629 = vmatprep.subr.mxu0 %v2187_v10  ;;  %700 = vmatprep.subr.mxu1 %v2189_v11 }
  0x53   :  { %v2439_v7 = vrot.slane %v2436_v60, %v71_v24  ;;  %v2444_v6 = vrot.slane %v2436_v60, %v83_v9  ;;  %v2449_v24 = vrot.slane %v2436_v60, %v79_v8 }
  0x55   :  { %3246 = vst [vmem:[#allocation33_spill] sm:$0xff] %v2439_v7  ;;  %3247 = vst [vmem:[#allocation34_spill] sm:$0xff] %v2444_v6 }
  0xe2   :  { %v180_v0 = vpop.f32.mrf.mxu0  ;;  %v293_v51 = vpop.f32.mrf.mxu1 }
  0xe3   :  { %v181_v10 = vadd.f32 %v180_v0, %v2439_v7  ;;  %v294_v2 = vadd.f32 %v293_v51, %v2449_v24  ;;  %v3252_v51 = vld [vmem:[#allocation22_spill] sm:$0xff] }
  0xe4   :  { %v182_v11 = vpop.f32.mrf.mxu0  ;;  %v295_v15 = vpop.f32.mrf.mxu1 }
  0xe5   :  { %v1789_v33 = vmul.f32 -1.442695, %v181_v10  ;;  %v296_v4 = vadd.f32 %v295_v15, %v2444_v6 }
  0xe7   :  { %1873 = vpow2.f32 %v1789_v33  ;;  %v1790_v5 = vmul.f32 -1.442695, %v296_v4  ;;  %v3249_v4 = vld [vmem:[#allocation18_spill] sm:$0xff] }
  0xe9   :  { %1875 = vpow2.f32 %v1790_v5  ;;  %v3250_v5 = vld [vmem:[#allocation21_spill] sm:$0xff] }
  0xea   :  { %1877 = vtanh.f32 %v294_v2  ;;  %v3248_v2 = vld [vmem:[#allocation19_spill] sm:$0xff] }
  0xf4   :  { %v1874_v0 = vpop.eup %1873 }
  0xf5   :  { %v378_v7 = vadd.f32 1.0, %v1874_v0  ;;  %v3254_v0 = vld [vmem:[#allocation25_spill] sm:$0xff] }
  0xf6   :  { %v1876_v10 = vpop.eup %1875 }
  0xf7   :  { %1879 = vrcp.f32 %v378_v7  ;;  %v385_v11 = vadd.f32 1.0, %v1876_v10  ;;  %v1878_v9 = vpop.eup %1877  ;;  %v3251_v7 = vld [vmem:[#allocation20_spill] sm:$0xff] }
  0xf8   :  { %v3255_v10 = vld [vmem:[#allocation24_spill] sm:$0xff] }
  0xf9   :  { %1881 = vrcp.f32 %v385_v11  ;;  %v3256_v11 = vld [vmem:[#allocation27_spill] sm:$0xff] }
 0x104   :  { %v1880_v33 = vpop.eup %1879 }
 0x105   :  { %v2452_v3 = vmul.f32 %v1880_v33, %v1878_v9  ;;  %v3257_v9 = vld [vmem:[#allocation26_spill] sm:$0xff]  ;;  %v3258_v33 = vld [vmem:[#allocation29_spill] sm:$0xff] }
 0x106   :  { %v1882_v15 = vpop.eup %1881 }
 0x107   :  { %1883 = vtanh.f32 %v2452_v3 }
 0x114   :  { %v1884_v8 = vpop.eup %1883 }
 0x115   :  { %v390_v6 = vmul.f32 %v1884_v8, %v1882_v15  ;;  %v3259_v15 = vld [vmem:[#allocation28_spill] sm:$0xff]  ;;  %v3260_v8 = vld [vmem:[#allocation31_spill] sm:$0xff] }
 0x117   :  { %520 = vmatmul.mubr.f32.vlgmr.msra.gmra.mxu0 %v390_v6  ;;  %591 = vmatmul.mubr.f32.vlgmr.msra.gmra.mxu1 %v390_v6  ;;  %v3253_v6 = vld [vmem:[#allocation23_spill] sm:$0xff] }
 0x118   :  { %630 = vmatpush1.msra.mxu0 %v2192_v12  ;;  %701 = vmatpush1.msra.mxu1 %v2195_v13 }
 0x119   :  { %631 = vmatprep.subr.mxu0 %v2198_v14  ;;  %702 = vmatprep.subr.mxu1 %v2204_v16 }
 0x11a   :  { %632 = vmatpush1.msra.mxu0 %v2208_v17  ;;  %703 = vmatpush1.msra.mxu1 %v2210_v18 }
 0x11b   :  { %633 = vmatprep.subr.mxu0 %v2214_v19  ;;  %704 = vmatprep.subr.mxu1 %v2216_v20 }
 0x11c   :  { %634 = vmatpush1.msra.mxu0 %v2220_v21  ;;  %705 = vmatpush1.msra.mxu1 %v2222_v22 }
 0x11d   :  { %635 = vmatprep.subr.mxu0 %v2226_v23  ;;  %706 = vmatprep.subr.mxu1 %v2231_v25 }
 0x11e   :  { %636 = vmatpush1.msra.mxu0 %v2235_v26  ;;  %707 = vmatpush1.msra.mxu1 %v2241_v28 }
 0x11f   :  { %637 = vmatprep.subr.mxu0 %v2239_v27  ;;  %708 = vmatprep.subr.mxu1 %v2249_v30 }
 0x120   :  { %638 = vmatpush1.msra.mxu0 %v2245_v29  ;;  %709 = vmatpush1.msra.mxu1 %v2255_v32 }
 0x121   :  { %639 = vmatprep.subr.mxu0 %v2253_v31  ;;  %710 = vmatprep.subr.mxu1 %v2262_v34 }
 0x122   :  { %640 = vmatpush1.msra.mxu0 %v2266_v35  ;;  %711 = vmatpush1.msra.mxu1 %v2272_v37 }
 0x123   :  { %641 = vmatprep.subr.mxu0 %v2270_v36  ;;  %712 = vmatprep.subr.mxu1 %v2280_v39 }
 0x124   :  { %642 = vmatpush1.msra.mxu0 %v2276_v38  ;;  %713 = vmatpush1.msra.mxu1 %v2286_v41 }
 0x125   :  { %643 = vmatprep.subr.mxu0 %v2284_v40  ;;  %714 = vmatprep.subr.mxu1 %v2293_v43 }
 0x126   :  { %644 = vmatpush1.msra.mxu0 %v2297_v44  ;;  %715 = vmatpush1.msra.mxu1 %v2303_v46 }
 0x127   :  { %645 = vmatprep.subr.mxu0 %v2301_v45  ;;  %716 = vmatprep.subr.mxu1 %v2311_v48 }
 0x128   :  { %646 = vmatpush1.msra.mxu0 %v2307_v47  ;;  %717 = vmatpush1.msra.mxu1 %v2317_v50 }
 0x129   :  { %647 = vmatprep.subr.mxu0 %v2315_v49  ;;  %718 = vmatprep.subr.mxu1 %v2324_v52 }
 0x12a   :  { %648 = vmatpush1.msra.mxu0 %v2328_v53  ;;  %719 = vmatpush1.msra.mxu1 %v2334_v55 }
 0x12b   :  { %649 = vmatprep.subr.mxu0 %v2332_v54  ;;  %720 = vmatprep.subr.mxu1 %v2342_v57 }
 0x12c   :  { %650 = vmatpush1.msra.mxu0 %v2338_v56  ;;  %721 = vmatpush1.msra.mxu1 %v2348_v59 }
 0x12d   :  { %651 = vmatprep.subr.mxu0 %v2346_v58  ;;  %722 = vmatprep.subr.mxu1 %v2355_v61  ;;  %v3292_v58 = vld [vmem:[#allocation34_spill] sm:$0xff] }
 0x12e   :  { %652 = vmatpush1.msra.mxu0 %v2359_v62  ;;  %723 = vmatpush1.msra.mxu1 %v2365_v1 }
 0x12f   :  { %653 = vmatprep.subr.mxu0 %v2363_v63  ;;  %724 = vmatprep.subr.mxu1 %v3248_v2 }
 0x130   :  { %654 = vmatpush1.msra.mxu0 %v3249_v4  ;;  %725 = vmatpush1.msra.mxu1 %v3250_v5  ;;  %v3261_v5 = vld [vmem:[#allocation30_spill] sm:$0xff] }
 0x131   :  { %655 = vmatprep.subr.mxu0 %v3251_v7  ;;  %726 = vmatprep.subr.mxu1 %v3252_v51  ;;  %v3262_v7 = vmov 0.0   ;;  %v3263_v51 = vld [vmem:[#allocation32_spill] sm:$0xff] }
 0x132   :  { %656 = vmatpush1.msra.mxu0 %v3253_v6  ;;  %727 = vmatpush1.msra.mxu1 %v3254_v0  ;;  %v3264_v0 = vld [vmem:[#allocation9_spill] sm:$0xff] }
 0x133   :  { %657 = vmatprep.subr.mxu0 %v3255_v10  ;;  %728 = vmatprep.subr.mxu1 %v3256_v11  ;;  %v3265_v10 = vld [vmem:[#allocation10_spill] sm:$0xff]  ;;  %v186_v11 = vpop.f32.mrf.mxu0 }
 0x134   :  { %658 = vmatpush1.msra.mxu0 %v3257_v9  ;;  %729 = vmatpush1.msra.mxu1 %v3258_v33  ;;  %v75_v33 = vsub.s32 1, %v2430_v42 }
 0x135   :  { %659 = vmatprep.subr.mxu0 %v3259_v15  ;;  %730 = vmatprep.subr.mxu1 %v3260_v8  ;;  %v188_v9 = vpop.f32.mrf.mxu0 }
 0x136   :  { %660 = vmatpush1.msra.mxu0 %v3261_v5  ;;  %693 = vmatprep.mubr.f32.mxu0 %v3262_v7  ;;  %v2525_v8 = vrot.slane %v2436_v60, %v75_v33 }
 0x137   :  { %731 = vmatpush1.msra.mxu1 %v3263_v51  ;;  %764 = vmatprep.mubr.f32.mxu1 %v3262_v7  ;;  %v2522_v6 = vpop.f32.mrf.mxu0 }
 0x138   :  { %803 = vmatprep.subr.mxu0 %v3264_v0  ;;  %874 = vmatprep.subr.mxu1 %v3265_v10  ;;  %3266 = vst [vmem:[#allocation35_spill] sm:$0xff] %v2522_v6  ;;  %3267 = vst [vmem:[#allocation36_spill] sm:$0xff] %v2525_v8 }
 0x139   :  { %v194_v5 = vpop.f32.mrf.mxu0 }
 0x13a   :  { %v2528_v15 = vadd.f32 %v194_v5, %v2525_v8 }
 0x13b   :  { %v2530_v51 = vpop.f32.mrf.mxu0 }
 0x13c   :  { %3268 = vst [vmem:[#allocation37_spill] sm:$0xff] %v2528_v15  ;;  %3269 = vst [vmem:[#allocation38_spill] sm:$0xff] %v2530_v51 }
 0x13d   :  { %v200_v7 = vpop.f32.mrf.mxu0 }
 0x13e   :  { %v2533_v0 = vadd.f32 %v200_v7, %v2525_v8  ;;  %v299_v7 = vpop.f32.mrf.mxu1 }
 0x13f   :  { %v2535_v10 = vpop.f32.mrf.mxu0 }
 0x140   :  { %3270 = vst [vmem:[#allocation39_spill] sm:$0xff] %v2533_v0  ;;  %3271 = vst [vmem:[#allocation40_spill] sm:$0xff] %v2535_v10  ;;  %v301_v0 = vpop.f32.mrf.mxu1 }
 0x141   :  { %v206_v4 = vpop.f32.mrf.mxu0 }
 0x142   :  { %v2538_v42 = vadd.f32 %v206_v4, %v2525_v8  ;;  %v2550_v2 = vpop.f32.mrf.mxu1 }
 0x143   :  { %v2540_v6 = vpop.f32.mrf.mxu0  ;;  %3277 = vst [vmem:[#allocation46_spill] sm:$0xff] %v2550_v2 }
 0x144   :  { %3272 = vst [vmem:[#allocation41_spill] sm:$0xff] %v2538_v42  ;;  %3273 = vst [vmem:[#allocation42_spill] sm:$0xff] %v2540_v6  ;;  %v2552_v10 = vpop.f32.mrf.mxu1 }
 0x145   :  { %v212_v60 = vpop.f32.mrf.mxu0  ;;  %3278 = vst [vmem:[#allocation47_spill] sm:$0xff] %v2552_v10 }
 0x146   :  { %v2543_v33 = vadd.f32 %v212_v60, %v2525_v8  ;;  %v2554_v4 = vpop.f32.mrf.mxu1 }
 0x147   :  { %v2545_v5 = vpop.f32.mrf.mxu0  ;;  %3279 = vst [vmem:[#allocation48_spill] sm:$0xff] %v2554_v4  ;;  %v3290_v4 = vld [vmem:[#allocation33_spill] sm:$0xff] }
 0x148   :  { %3274 = vst [vmem:[#allocation43_spill] sm:$0xff] %v2543_v33  ;;  %3275 = vst [vmem:[#allocation44_spill] sm:$0xff] %v2545_v5  ;;  %v2556_v42 = vpop.f32.mrf.mxu1 }
 0x149   :  { %v218_v15 = vpop.f32.mrf.mxu0  ;;  %3280 = vst [vmem:[#allocation49_spill] sm:$0xff] %v2556_v42  ;;  %v187_v42 = vadd.f32 %v186_v11, %v3290_v4 }
 0x14a   :  { %v2548_v51 = vadd.f32 %v218_v15, %v2525_v8  ;;  %v2558_v6 = vpop.f32.mrf.mxu1 }
 0x14b   :  { %3281 = vst [vmem:[#allocation50_spill] sm:$0xff] %v2558_v6  ;;  %v2570_v63 = vpop.f32.mrf.mxu0  ;;  %v189_v6 = vadd.f32 %v188_v9, %v2525_v8 }
 0x14c   :  { %3276 = vst [vmem:[#allocation45_spill] sm:$0xff] %v2548_v51  ;;  %v2560_v60 = vpop.f32.mrf.mxu1  ;;  %3287 = vst [vmem:[#allocation56_spill] sm:$0xff] %v2570_v63 }
 0x14d   :  { %3282 = vst [vmem:[#allocation51_spill] sm:$0xff] %v2560_v60  ;;  %v2574_v10 = vpop.f32.mrf.mxu0 }
 0x14e   :  { %v2562_v33 = vpop.f32.mrf.mxu1  ;;  %3289 = vst [vmem:[#allocation58_spill] sm:$0xff] %v2574_v10  ;;  %v300_v10 = vadd.f32 %v299_v7, %v2449_v24  ;;  %v3297_v7 = vld [vmem:[#allocation15_spill] sm:$0xff] }
 0x14f   :  { %3283 = vst [vmem:[#allocation52_spill] sm:$0xff] %v2562_v33 }
 0x150   :  { %v2564_v5 = vpop.f32.mrf.mxu1 }
 0x151   :  { %3284 = vst [vmem:[#allocation53_spill] sm:$0xff] %v2564_v5 }
 0x152   :  { %v2566_v15 = vpop.f32.mrf.mxu1 }
 0x153   :  { %3285 = vst [vmem:[#allocation54_spill] sm:$0xff] %v2566_v15 }
 0x154   :  { %v2568_v51 = vpop.f32.mrf.mxu1 }
 0x155   :  { %3286 = vst [vmem:[#allocation55_spill] sm:$0xff] %v2568_v51 }
 0x156   :  { %v2572_v2 = vpop.f32.mrf.mxu1 }
 0x157   :  { %3288 = vst [vmem:[#allocation57_spill] sm:$0xff] %v2572_v2  ;;  %v302_v2 = vadd.f32 %v301_v0, %v3292_v58 }
 0x158   :  { %v2578_v60 = vpop.f32.mrf.mxu1 }
 0x159   :  { %3291 = vst [vmem:[#allocation59_spill] sm:$0xff] %v2578_v60  ;;  %v3313_v60 = vld [vmem:[#allocation30_spill] sm:$0xff] }
 0x1d7   :  { %v521_v1 = vpop.f32.mrf.mxu0  ;;  %v592_v15 = vpop.f32.mrf.mxu1 }
 0x1d8   :  { %v601_v33 = vadd.f32 %v521_v1, %v187_v42  ;;  %v603_v56 = vadd.f32 %v592_v15, %v300_v10  ;;  %v3299_v15 = vld [vmem:[#allocation16_spill] sm:$0xff] }
 0x1d9   :  { %v523_v62 = vpop.f32.mrf.mxu0  ;;  %v594_v63 = vpop.f32.mrf.mxu1 }
 0x1da   :  { %v1791_v5 = vmul.f32 -1.442695, %v601_v33  ;;  %v602_v61 = vadd.f32 %v523_v62, %v189_v6  ;;  %v604_v59 = vadd.f32 %v594_v63, %v302_v2 }
 0x1dc   :  { %1885 = vpow2.f32 %v1791_v5  ;;  %v1792_v51 = vmul.f32 -1.442695, %v602_v61  ;;  %v1793_v11 = vmul.f32 -1.442695, %v604_v59  ;;  %v3296_v5 = vld [vmem:[#allocation14_spill] sm:$0xff] }
 0x1de   :  { %1887 = vpow2.f32 %v1792_v51 }
 0x1df   :  { %1889 = vpow2.f32 %v1793_v11  ;;  %v3300_v11 = vld [vmem:[#allocation19_spill] sm:$0xff] }
 0x1e9   :  { %v1886_v4 = vpop.eup %1885 }
 0x1ea   :  { %v608_v9 = vadd.f32 1.0, %v1886_v4  ;;  %v3298_v4 = vld [vmem:[#allocation17_spill] sm:$0xff] }
 0x1eb   :  { %v1888_v8 = vpop.eup %1887 }
 0x1ec   :  { %1891 = vrcp.f32 %v608_v9  ;;  %v614_v1 = vadd.f32 1.0, %v1888_v8  ;;  %v1890_v62 = vpop.eup %1889  ;;  %v3295_v8 = vld [vmem:[#allocation12_spill] sm:$0xff]  ;;  %v3301_v9 = vld [vmem:[#allocation18_spill] sm:$0xff] }
 0x1ed   :  { %1893 = vtanh.f32 %v603_v56  ;;  %v621_v42 = vadd.f32 1.0, %v1890_v62  ;;  %v3293_v56 = vld [vmem:[#allocation11_spill] sm:$0xff]  ;;  %v3303_v62 = vld [vmem:[#allocation20_spill] sm:$0xff] }
 0x1ee   :  { %1895 = vrcp.f32 %v614_v1  ;;  %v3302_v1 = vld [vmem:[#allocation21_spill] sm:$0xff] }
 0x1ef   :  { %1897 = vrcp.f32 %v621_v42  ;;  %v3307_v42 = vld [vmem:[#allocation24_spill] sm:$0xff] }
 0x1f9   :  { %v1892_v6 = vpop.eup %1891 }
 0x1fa   :  { %v1894_v61 = vpop.eup %1893 }
 0x1fb   :  { %v1896_v51 = vpop.eup %1895  ;;  %v625_v33 = vmul.f32 %v1894_v61, %v1892_v6  ;;  %v3304_v6 = vld [vmem:[#allocation22_spill] sm:$0xff]  ;;  %v3305_v61 = vld [vmem:[#allocation23_spill] sm:$0xff] }
 0x1fc   :  { %v624_v63 = vmul.f32 %v1896_v51, %v2452_v3  ;;  %v1898_v59 = vpop.eup %1897  ;;  %v3294_v3 = vld [vmem:[#allocation13_spill] sm:$0xff] }
 0x1fd   :  { %v3306_v51 = vld [vmem:[#allocation25_spill] sm:$0xff] }
 0x1fe   :  { %v2583_v2 = vadd.f32 %v625_v33, %v624_v63  ;;  %v3308_v33 = vld [vmem:[#allocation27_spill] sm:$0xff]  ;;  %v3309_v63 = vld [vmem:[#allocation26_spill] sm:$0xff] }
 0x200   :  { %1899 = vtanh.f32 %v2583_v2 }
 0x20d   :  { %v1900_v0 = vpop.eup %1899 }
 0x20e   :  { %v628_v10 = vmul.f32 %v1900_v0, %v1898_v59  ;;  %v3310_v59 = vld [vmem:[#allocation29_spill] sm:$0xff]  ;;  %v3311_v0 = vld [vmem:[#allocation28_spill] sm:$0xff] }
 0x210   :  { %694 = vmatmul.mubr.f32.vlgmr.msra.gmra.mxu0 %v628_v10  ;;  %765 = vmatmul.mubr.f32.vlgmr.msra.gmra.mxu1 %v628_v10  ;;  %v3312_v10 = vld [vmem:[#allocation31_spill] sm:$0xff] }
 0x211   :  { %804 = vmatpush1.msra.mxu0 %v2192_v12  ;;  %875 = vmatpush1.msra.mxu1 %v2195_v13 }
 0x212   :  { %805 = vmatprep.subr.mxu0 %v2198_v14  ;;  %876 = vmatprep.subr.mxu1 %v2204_v16 }
 0x213   :  { %806 = vmatpush1.msra.mxu0 %v2208_v17  ;;  %877 = vmatpush1.msra.mxu1 %v2210_v18 }
 0x214   :  { %807 = vmatprep.subr.mxu0 %v2214_v19  ;;  %878 = vmatprep.subr.mxu1 %v2216_v20 }
 0x215   :  { %808 = vmatpush1.msra.mxu0 %v2220_v21  ;;  %879 = vmatpush1.msra.mxu1 %v2222_v22 }
 0x216   :  { %809 = vmatprep.subr.mxu0 %v2226_v23  ;;  %880 = vmatprep.subr.mxu1 %v2231_v25 }
 0x217   :  { %810 = vmatpush1.msra.mxu0 %v2235_v26  ;;  %881 = vmatpush1.msra.mxu1 %v2241_v28 }
 0x218   :  { %811 = vmatprep.subr.mxu0 %v2239_v27  ;;  %882 = vmatprep.subr.mxu1 %v2249_v30 }
 0x219   :  { %812 = vmatpush1.msra.mxu0 %v2245_v29  ;;  %883 = vmatpush1.msra.mxu1 %v2255_v32 }
 0x21a   :  { %813 = vmatprep.subr.mxu0 %v2253_v31  ;;  %884 = vmatprep.subr.mxu1 %v2262_v34 }
 0x21b   :  { %814 = vmatpush1.msra.mxu0 %v2266_v35  ;;  %885 = vmatpush1.msra.mxu1 %v2272_v37 }
 0x21c   :  { %815 = vmatprep.subr.mxu0 %v2270_v36  ;;  %886 = vmatprep.subr.mxu1 %v2280_v39 }
 0x21d   :  { %816 = vmatpush1.msra.mxu0 %v2276_v38  ;;  %887 = vmatpush1.msra.mxu1 %v2286_v41 }
 0x21e   :  { %817 = vmatprep.subr.mxu0 %v2284_v40  ;;  %888 = vmatprep.subr.mxu1 %v2293_v43 }
 0x21f   :  { %818 = vmatpush1.msra.mxu0 %v2297_v44  ;;  %889 = vmatpush1.msra.mxu1 %v2303_v46 }
 0x220   :  { %819 = vmatprep.subr.mxu0 %v2301_v45  ;;  %890 = vmatprep.subr.mxu1 %v2311_v48 }
 0x221   :  { %820 = vmatpush1.msra.mxu0 %v2307_v47  ;;  %891 = vmatpush1.msra.mxu1 %v2317_v50 }
 0x222   :  { %821 = vmatprep.subr.mxu0 %v2315_v49  ;;  %892 = vmatprep.subr.mxu1 %v2324_v52 }
 0x223   :  { %822 = vmatpush1.msra.mxu0 %v2328_v53  ;;  %893 = vmatpush1.msra.mxu1 %v2334_v55 }
 0x224   :  { %823 = vmatprep.subr.mxu0 %v2332_v54  ;;  %894 = vmatprep.subr.mxu1 %v2342_v57 }
 0x225   :  { %824 = vmatpush1.msra.mxu0 %v3293_v56  ;;  %895 = vmatpush1.msra.mxu1 %v3294_v3 }
 0x226   :  { %825 = vmatprep.subr.mxu0 %v3295_v8  ;;  %896 = vmatprep.subr.mxu1 %v3296_v5 }
 0x227   :  { %826 = vmatpush1.msra.mxu0 %v3297_v7  ;;  %897 = vmatpush1.msra.mxu1 %v3298_v4 }
 0x228   :  { %827 = vmatprep.subr.mxu0 %v3299_v15  ;;  %898 = vmatprep.subr.mxu1 %v3300_v11 }
 0x229   :  { %828 = vmatpush1.msra.mxu0 %v3301_v9  ;;  %899 = vmatpush1.msra.mxu1 %v3302_v1 }
 0x22a   :  { %829 = vmatprep.subr.mxu0 %v3303_v62  ;;  %900 = vmatprep.subr.mxu1 %v3304_v6  ;;  %v3314_v62 = vmov 0.0   ;;  %v3315_v6 = vld [vmem:[#allocation32_spill] sm:$0xff] }
 0x22b   :  { %830 = vmatpush1.msra.mxu0 %v3305_v61  ;;  %901 = vmatpush1.msra.mxu1 %v3306_v51  ;;  %v3316_v51 = vld [vmem:[#allocation9_spill] sm:$0xff] }
 0x22c   :  { %831 = vmatprep.subr.mxu0 %v3307_v42  ;;  %902 = vmatprep.subr.mxu1 %v3308_v33  ;;  %v3317_v42 = vld [vmem:[#allocation10_spill] sm:$0xff]  ;;  %v3318_v33 = vld [vmem:[#allocation33_spill] sm:$0xff] }
 0x22d   :  { %832 = vmatpush1.msra.mxu0 %v3309_v63  ;;  %903 = vmatpush1.msra.mxu1 %v3310_v59  ;;  %v3319_v63 = vld [vmem:[#allocation35_spill] sm:$0xff] }
 0x22e   :  { %833 = vmatprep.subr.mxu0 %v3311_v0  ;;  %904 = vmatprep.subr.mxu1 %v3312_v10  ;;  %v193_v61 = vadd.f32 %v3319_v63, %v3318_v33  ;;  %v3320_v10 = vld [vmem:[#allocation37_spill] sm:$0xff] }
 0x22f   :  { %834 = vmatpush1.msra.mxu0 %v3313_v60  ;;  %867 = vmatprep.mubr.f32.mxu0 %v3314_v62 }
 0x230   :  { %905 = vmatpush1.msra.mxu1 %v3315_v6  ;;  %938 = vmatprep.mubr.f32.mxu1 %v3314_v62  ;;  %v3321_v62 = vld [vmem:[#allocation47_spill] sm:$0xff] }
 0x231   :  { %977 = vmatprep.subr.mxu0 %v3316_v51  ;;  %1048 = vmatprep.subr.mxu1 %v3317_v42  ;;  %v308_v4 = vadd.f32 %v3321_v62, %v3292_v58  ;;  %v3322_v42 = vld [vmem:[#allocation46_spill] sm:$0xff] }
 0x232   :  { %v306_v7 = vadd.f32 %v3322_v42, %v2449_v24  ;;  %v3347_v42 = vld [vmem:[#allocation39_spill] sm:$0xff] }
 0x2d0   :  { %v695_v59 = vpop.f32.mrf.mxu0  ;;  %v766_v60 = vpop.f32.mrf.mxu1 }
 0x2d1   :  { %v775_v1 = vadd.f32 %v695_v59, %v193_v61  ;;  %v777_v5 = vadd.f32 %v766_v60, %v306_v7 }
 0x2d2   :  { %v697_v0 = vpop.f32.mrf.mxu0  ;;  %v768_v6 = vpop.f32.mrf.mxu1 }
 0x2d3   :  { %v1794_v9 = vmul.f32 -1.442695, %v775_v1  ;;  %v776_v11 = vadd.f32 %v697_v0, %v3320_v10  ;;  %v778_v51 = vadd.f32 %v768_v6, %v308_v4 }
 0x2d5   :  { %1901 = vpow2.f32 %v1794_v9  ;;  %v1795_v15 = vmul.f32 -1.442695, %v776_v11  ;;  %v1796_v63 = vmul.f32 -1.442695, %v778_v51 }
 0x2d7   :  { %1903 = vpow2.f32 %v1795_v15 }
 0x2d8   :  { %1905 = vtanh.f32 %v777_v5 }
 0x2d9   :  { %1907 = vpow2.f32 %v1796_v63 }
 0x2e2   :  { %v1902_v33 = vpop.eup %1901 }
 0x2e3   :  { %v782_v61 = vadd.f32 1.0, %v1902_v33 }
 0x2e4   :  { %v1904_v1 = vpop.eup %1903 }
 0x2e5   :  { %1909 = vrcp.f32 %v782_v61  ;;  %v788_v9 = vadd.f32 1.0, %v1904_v1  ;;  %v1906_v11 = vpop.eup %1905 }
 0x2e6   :  { %v1908_v15 = vpop.eup %1907 }
 0x2e7   :  { %1911 = vrcp.f32 %v788_v9  ;;  %v795_v62 = vadd.f32 1.0, %v1908_v15  ;;  %v3348_v9 = vld [vmem:[#allocation49_spill] sm:$0xff] }
 0x2e9   :  { %1913 = vrcp.f32 %v795_v62 }
 0x2f2   :  { %v1910_v59 = vpop.eup %1909 }
 0x2f3   :  { %v799_v0 = vmul.f32 %v1910_v59, %v1906_v11  ;;  %v314_v11 = vadd.f32 %v3348_v9, %v3292_v58  ;;  %v3349_v59 = vld [vmem:[#allocation48_spill] sm:$0xff]  ;;  %v2746_v9 = vld [vmem:[#allocation3 + $0x1c8] sm:$0xff] }
 0x2f4   :  { %v1912_v10 = vpop.eup %1911 }
 0x2f5   :  { %v798_v4 = vmul.f32 %v1912_v10, %v2583_v2 }
 0x2f6   :  { %v1914_v60 = vpop.eup %1913 }
 0x2f7   :  { %v2660_v6 = vadd.f32 %v799_v0, %v798_v4  ;;  %v312_v0 = vadd.f32 %v3349_v59, %v2449_v24  ;;  %v2758_v59 = vld [vmem:[#allocation3 + $0x1a8] sm:$0xff] }
 0x2f9   :  { %1915 = vtanh.f32 %v2660_v6 }
 0x306   :  { %v1916_v5 = vpop.eup %1915 }
 0x307   :  { %v802_v7 = vmul.f32 %v1916_v5, %v1914_v60 }
 0x309   :  { %868 = vmatmul.mubr.f32.vlgmr.msra.gmra.mxu0 %v802_v7  ;;  %939 = vmatmul.mubr.f32.vlgmr.msra.gmra.mxu1 %v802_v7 }
 0x30a   :  { %978 = vmatpush1.msra.mxu0 %v2192_v12  ;;  %1049 = vmatpush1.msra.mxu1 %v2195_v13  ;;  %v3323_v12 = vld [vmem:[#allocation14_spill] sm:$0xff]  ;;  %v3324_v13 = vld [vmem:[#allocation15_spill] sm:$0xff] }
 0x30b   :  { %979 = vmatprep.subr.mxu0 %v2198_v14  ;;  %1050 = vmatprep.subr.mxu1 %v2204_v16  ;;  %v3325_v14 = vld [vmem:[#allocation17_spill] sm:$0xff]  ;;  %v3326_v16 = vld [vmem:[#allocation16_spill] sm:$0xff] }
 0x30c   :  { %980 = vmatpush1.msra.mxu0 %v2208_v17  ;;  %1051 = vmatpush1.msra.mxu1 %v2210_v18  ;;  %v3327_v17 = vld [vmem:[#allocation19_spill] sm:$0xff]  ;;  %v3328_v18 = vld [vmem:[#allocation18_spill] sm:$0xff] }
 0x30d   :  { %981 = vmatprep.subr.mxu0 %v2214_v19  ;;  %1052 = vmatprep.subr.mxu1 %v2216_v20  ;;  %v3329_v19 = vld [vmem:[#allocation21_spill] sm:$0xff]  ;;  %v3330_v20 = vld [vmem:[#allocation20_spill] sm:$0xff] }
 0x30e   :  { %982 = vmatpush1.msra.mxu0 %v2220_v21  ;;  %1053 = vmatpush1.msra.mxu1 %v2222_v22  ;;  %v3331_v21 = vld [vmem:[#allocation22_spill] sm:$0xff]  ;;  %v3332_v22 = vld [vmem:[#allocation23_spill] sm:$0xff] }
 0x30f   :  { %983 = vmatprep.subr.mxu0 %v2226_v23  ;;  %1054 = vmatprep.subr.mxu1 %v2231_v25  ;;  %v3333_v23 = vld [vmem:[#allocation25_spill] sm:$0xff]  ;;  %v3334_v25 = vld [vmem:[#allocation24_spill] sm:$0xff] }
 0x310   :  { %984 = vmatpush1.msra.mxu0 %v2235_v26  ;;  %1055 = vmatpush1.msra.mxu1 %v2241_v28  ;;  %v3335_v26 = vld [vmem:[#allocation27_spill] sm:$0xff]  ;;  %v3337_v28 = vld [vmem:[#allocation29_spill] sm:$0xff] }
 0x311   :  { %985 = vmatprep.subr.mxu0 %v2239_v27  ;;  %1056 = vmatprep.subr.mxu1 %v2249_v30  ;;  %v3336_v27 = vld [vmem:[#allocation26_spill] sm:$0xff]  ;;  %v3339_v30 = vld [vmem:[#allocation31_spill] sm:$0xff] }
 0x312   :  { %986 = vmatpush1.msra.mxu0 %v2245_v29  ;;  %1057 = vmatpush1.msra.mxu1 %v2255_v32  ;;  %v3338_v29 = vld [vmem:[#allocation28_spill] sm:$0xff]  ;;  %v3341_v32 = vmov 0.0  }
 0x313   :  { %987 = vmatprep.subr.mxu0 %v2253_v31  ;;  %1058 = vmatprep.subr.mxu1 %v2262_v34  ;;  %v3340_v31 = vld [vmem:[#allocation30_spill] sm:$0xff]  ;;  %v3342_v34 = vld [vmem:[#allocation32_spill] sm:$0xff] }
 0x314   :  { %988 = vmatpush1.msra.mxu0 %v2266_v35  ;;  %1059 = vmatpush1.msra.mxu1 %v2272_v37  ;;  %v3343_v35 = vld [vmem:[#allocation9_spill] sm:$0xff] }
 0x315   :  { %989 = vmatprep.subr.mxu0 %v2270_v36  ;;  %1060 = vmatprep.subr.mxu1 %v2280_v39  ;;  %v3344_v36 = vld [vmem:[#allocation10_spill] sm:$0xff]  ;;  %v3345_v37 = vld [vmem:[#allocation33_spill] sm:$0xff] }
 0x316   :  { %990 = vmatpush1.msra.mxu0 %v2276_v38  ;;  %1061 = vmatpush1.msra.mxu1 %v2286_v41  ;;  %v3346_v38 = vld [vmem:[#allocation38_spill] sm:$0xff] }
 0x317   :  { %991 = vmatprep.subr.mxu0 %v2284_v40  ;;  %1062 = vmatprep.subr.mxu1 %v2293_v43  ;;  %v199_v39 = vadd.f32 %v3346_v38, %v3345_v37 }
 0x318   :  { %992 = vmatpush1.msra.mxu0 %v2297_v44  ;;  %1063 = vmatpush1.msra.mxu1 %v2303_v46 }
 0x319   :  { %993 = vmatprep.subr.mxu0 %v2301_v45  ;;  %1064 = vmatprep.subr.mxu1 %v2311_v48 }
 0x31a   :  { %994 = vmatpush1.msra.mxu0 %v2307_v47  ;;  %1065 = vmatpush1.msra.mxu1 %v2317_v50 }
 0x31b   :  { %995 = vmatprep.subr.mxu0 %v2315_v49  ;;  %1066 = vmatprep.subr.mxu1 %v2324_v52 }
 0x31c   :  { %996 = vmatpush1.msra.mxu0 %v2328_v53  ;;  %1067 = vmatpush1.msra.mxu1 %v2334_v55 }
 0x31d   :  { %997 = vmatprep.subr.mxu0 %v2332_v54  ;;  %1068 = vmatprep.subr.mxu1 %v2342_v57 }
 0x31e   :  { %998 = vmatpush1.msra.mxu0 %v3293_v56  ;;  %1069 = vmatpush1.msra.mxu1 %v3294_v3 }
 0x31f   :  { %999 = vmatprep.subr.mxu0 %v3295_v8  ;;  %1070 = vmatprep.subr.mxu1 %v3323_v12 }
 0x320   :  { %1000 = vmatpush1.msra.mxu0 %v3324_v13  ;;  %1071 = vmatpush1.msra.mxu1 %v3325_v14 }
 0x321   :  { %1001 = vmatprep.subr.mxu0 %v3326_v16  ;;  %1072 = vmatprep.subr.mxu1 %v3327_v17 }
 0x322   :  { %1002 = vmatpush1.msra.mxu0 %v3328_v18  ;;  %1073 = vmatpush1.msra.mxu1 %v3329_v19 }
 0x323   :  { %1003 = vmatprep.subr.mxu0 %v3330_v20  ;;  %1074 = vmatprep.subr.mxu1 %v3331_v21 }
 0x324   :  { %1004 = vmatpush1.msra.mxu0 %v3332_v22  ;;  %1075 = vmatpush1.msra.mxu1 %v3333_v23 }
 0x325   :  { %1005 = vmatprep.subr.mxu0 %v3334_v25  ;;  %1076 = vmatprep.subr.mxu1 %v3335_v26 }
 0x326   :  { %1006 = vmatpush1.msra.mxu0 %v3336_v27  ;;  %1077 = vmatpush1.msra.mxu1 %v3337_v28 }
 0x327   :  { %1007 = vmatprep.subr.mxu0 %v3338_v29  ;;  %1078 = vmatprep.subr.mxu1 %v3339_v30 }
 0x328   :  { %1008 = vmatpush1.msra.mxu0 %v3340_v31  ;;  %1041 = vmatprep.mubr.f32.mxu0 %v3341_v32 }
 0x329   :  { %1079 = vmatpush1.msra.mxu1 %v3342_v34  ;;  %1112 = vmatprep.mubr.f32.mxu1 %v3341_v32 }
 0x32a   :  { %1151 = vmatprep.subr.mxu0 %v3343_v35  ;;  %1222 = vmatprep.subr.mxu1 %v3344_v36 }
 0x3c9   :  { %v869_v40 = vpop.f32.mrf.mxu0  ;;  %v940_v63 = vpop.f32.mrf.mxu1 }
 0x3ca   :  { %v949_v41 = vadd.f32 %v869_v40, %v199_v39  ;;  %v951_v10 = vadd.f32 %v940_v63, %v312_v0  ;;  %v2761_v0 = vld [vmem:[#allocation3 + $0x1b8] sm:$0xff] }
 0x3cb   :  { %v871_v2 = vpop.f32.mrf.mxu0  ;;  %v942_v1 = vpop.f32.mrf.mxu1 }
 0x3cc   :  { %v1797_v51 = vmul.f32 -1.442695, %v949_v41  ;;  %v950_v33 = vadd.f32 %v871_v2, %v3347_v42  ;;  %v952_v15 = vadd.f32 %v942_v1, %v314_v11  ;;  %v2743_v1 = vld [vmem:[#allocation3 + $0x1f0] sm:$0xff]  ;;  %v2752_v11 = vld [vmem:[#allocation3 + $0x1c0] sm:$0xff] }
 0x3ce   :  { %1917 = vpow2.f32 %v1797_v51  ;;  %v1798_v61 = vmul.f32 -1.442695, %v950_v33  ;;  %v1799_v62 = vmul.f32 -1.442695, %v952_v15  ;;  %v2755_v15 = vld [vmem:[#allocation3 + $0x1d0] sm:$0xff] }
 0x3d0   :  { %1919 = vpow2.f32 %v1798_v61  ;;  %v2740_v61 = vld [vmem:[#allocation3 + $0x1e0] sm:$0xff] }
 0x3d1   :  { %1921 = vtanh.f32 %v951_v10  ;;  %v2764_v10 = vld [vmem:[#allocation3 + $0x1a0] sm:$0xff] }
 0x3d2   :  { %1923 = vpow2.f32 %v1799_v62  ;;  %v2767_v62 = vld [vmem:[#allocation3 + $0x1b0] sm:$0xff] }
 0x3db   :  { %v1918_v4 = vpop.eup %1917 }
 0x3dc   :  { %v956_v60 = vadd.f32 1.0, %v1918_v4  ;;  %v2770_v4 = vld [vmem:[#allocation3 + $0x188] sm:$0xff] }
 0x3dd   :  { %v1920_v5 = vpop.eup %1919 }
 0x3de   :  { %1925 = vrcp.f32 %v956_v60  ;;  %v962_v7 = vadd.f32 1.0, %v1920_v5  ;;  %v1922_v35 = vpop.eup %1921  ;;  %v2773_v60 = vld [vmem:[#allocation3 + $0x198] sm:$0xff]  ;;  %v2776_v5 = vld [vmem:[#allocation3 + $0x180] sm:$0xff] }
 0x3df   :  { %v1924_v36 = vpop.eup %1923 }
 0x3e0   :  { %1927 = vrcp.f32 %v962_v7  ;;  %v969_v41 = vadd.f32 1.0, %v1924_v36  ;;  %v2779_v7 = vld [vmem:[#allocation3 + $0x190] sm:$0xff]  ;;  %v2785_v36 = vld [vmem:[#allocation3 + $0x178] sm:$0xff] }
 0x3e2   :  { %1929 = vrcp.f32 %v969_v41  ;;  %v2797_v41 = vld [vmem:[#allocation3 + $0x158] sm:$0xff] }
 0x3e3   :  { %3351 = vst [vmem:[#allocation11_spill] sm:$0xff] %v2797_v41 }
 0x3eb   :  { %v1926_v38 = vpop.eup %1925 }
 0x3ec   :  { %v973_v39 = vmul.f32 %v1926_v38, %v1922_v35  ;;  %v2782_v35 = vld [vmem:[#allocation3 + $0x168] sm:$0xff]  ;;  %v2788_v38 = vld [vmem:[#allocation3 + $0x160] sm:$0xff] }
 0x3ed   :  { %v1928_v40 = vpop.eup %1927 }
 0x3ee   :  { %v972_v2 = vmul.f32 %v1928_v40, %v2660_v6  ;;  %v2749_v6 = vld [vmem:[#allocation3 + $0x1d8] sm:$0xff]  ;;  %v2794_v40 = vld [vmem:[#allocation3 + $0x148] sm:$0xff] }
 0x3ef   :  { %v1930_v42 = vpop.eup %1929  ;;  %3350 = vst [vmem:[#allocation34_spill] sm:$0xff] %v2794_v40 }
 0x3f0   :  { %v2737_v51 = vadd.f32 %v973_v39, %v972_v2  ;;  %v2791_v39 = vld [vmem:[#allocation3 + $0x170] sm:$0xff]  ;;  %v2800_v2 = vld [vmem:[#allocation3 + $0x140] sm:$0xff] }
 0x3f1   :  { %3352 = vst [vmem:[#allocation13_spill] sm:$0xff] %v2800_v2 }
 0x3f2   :  { %1931 = vtanh.f32 %v2737_v51 }
 0x3ff   :  { %v1932_v33 = vpop.eup %1931 }
 0x400   :  { %v976_v63 = vmul.f32 %v1932_v33, %v1930_v42  ;;  %v2803_v42 = vld [vmem:[#allocation3 + $0x150] sm:$0xff]  ;;  %v2806_v33 = vld [vmem:[#allocation3 + $0x128] sm:$0xff] }
 0x402   :  { %1042 = vmatmul.mubr.f32.vlgmr.msra.gmra.mxu0 %v976_v63  ;;  %1113 = vmatmul.mubr.f32.vlgmr.msra.gmra.mxu1 %v976_v63  ;;  %v2809_v63 = vld [vmem:[#allocation3 + $0x138] sm:$0xff] }
 0x403   :  { %1152 = vmatpush1.msra.mxu0 %v2740_v61  ;;  %1223 = vmatpush1.msra.mxu1 %v2743_v1 }
 0x404   :  { %1153 = vmatprep.subr.mxu0 %v2746_v9  ;;  %1224 = vmatprep.subr.mxu1 %v2749_v6 }
 0x405   :  { %1154 = vmatpush1.msra.mxu0 %v2752_v11  ;;  %1225 = vmatpush1.msra.mxu1 %v2755_v15 }
 0x406   :  { %1155 = vmatprep.subr.mxu0 %v2758_v59  ;;  %1226 = vmatprep.subr.mxu1 %v2761_v0 }
 0x407   :  { %1156 = vmatpush1.msra.mxu0 %v2764_v10  ;;  %1227 = vmatpush1.msra.mxu1 %v2767_v62 }
 0x408   :  { %1157 = vmatprep.subr.mxu0 %v2770_v4  ;;  %1228 = vmatprep.subr.mxu1 %v2773_v60 }
 0x409   :  { %1158 = vmatpush1.msra.mxu0 %v2776_v5  ;;  %1229 = vmatpush1.msra.mxu1 %v2779_v7 }
 0x40a   :  { %1159 = vmatprep.subr.mxu0 %v2782_v35  ;;  %1230 = vmatprep.subr.mxu1 %v2785_v36 }
 0x40b   :  { %1160 = vmatpush1.msra.mxu0 %v2788_v38  ;;  %1231 = vmatpush1.msra.mxu1 %v2791_v39 }
 0x40c   :  { %1161 = vmatprep.subr.mxu0 %v2794_v40  ;;  %1232 = vmatprep.subr.mxu1 %v2797_v41  ;;  %v2812_v40 = vld [vmem:[#allocation3 + $0x120] sm:$0xff]  ;;  %v2815_v41 = vld [vmem:[#allocation3 + $0x130] sm:$0xff] }
 0x40d   :  { %1162 = vmatpush1.msra.mxu0 %v2800_v2  ;;  %1233 = vmatpush1.msra.mxu1 %v2803_v42  ;;  %v2818_v2 = vld [vmem:[#allocation3 + $0x108] sm:$0xff] }
 0x40e   :  { %1163 = vmatprep.subr.mxu0 %v2806_v33  ;;  %1234 = vmatprep.subr.mxu1 %v2809_v63 }
 0x40f   :  { %1164 = vmatpush1.msra.mxu0 %v2812_v40  ;;  %1235 = vmatpush1.msra.mxu1 %v2815_v41 }
 0x410   :  { %1165 = vmatprep.subr.mxu0 %v2818_v2  ;;  %1236 = vmatprep.subr.mxu1 %v2293_v43  ;;  %v2858_v43 = vld [vmem:[#allocation3 + $0x1e8] sm:$0xff] }
 0x411   :  { %1166 = vmatpush1.msra.mxu0 %v2297_v44  ;;  %1237 = vmatpush1.msra.mxu1 %v2303_v46  ;;  %v2861_v44 = vld [vmem:[#allocation3 + $0x1f8] sm:$0xff] }
 0x412   :  { %1167 = vmatprep.subr.mxu0 %v2301_v45  ;;  %1238 = vmatprep.subr.mxu1 %v2311_v48  ;;  %v3353_v45 = vld [vmem:[#allocation40_spill] sm:$0xff] }
 0x413   :  { %1168 = vmatpush1.msra.mxu0 %v2307_v47  ;;  %1239 = vmatpush1.msra.mxu1 %v2317_v50  ;;  %v205_v46 = vadd.f32 %v3353_v45, %v3345_v37  ;;  %v3358_v45 = vld [vmem:[#allocation11_spill] sm:$0xff] }
 0x414   :  { %1169 = vmatprep.subr.mxu0 %v2315_v49  ;;  %1240 = vmatprep.subr.mxu1 %v2324_v52  ;;  %v3354_v52 = vld [vmem:[#allocation41_spill] sm:$0xff] }
 0x415   :  { %1170 = vmatpush1.msra.mxu0 %v2328_v53  ;;  %1241 = vmatpush1.msra.mxu1 %v2334_v55 }
 0x416   :  { %1171 = vmatprep.subr.mxu0 %v2332_v54  ;;  %1242 = vmatprep.subr.mxu1 %v2342_v57 }
 0x417   :  { %1172 = vmatpush1.msra.mxu0 %v3293_v56  ;;  %1243 = vmatpush1.msra.mxu1 %v3294_v3  ;;  %v3355_v56 = vld [vmem:[#allocation51_spill] sm:$0xff] }
 0x418   :  { %1173 = vmatprep.subr.mxu0 %v3295_v8  ;;  %1244 = vmatprep.subr.mxu1 %v3323_v12  ;;  %v320_v3 = vadd.f32 %v3355_v56, %v3292_v58  ;;  %v3356_v12 = vld [vmem:[#allocation50_spill] sm:$0xff]  ;;  %v2929_v56 = vld [vmem:[#allocation3 + $0xc0] sm:$0xff] }
 0x419   :  { %1174 = vmatpush1.msra.mxu0 %v3324_v13  ;;  %1245 = vmatpush1.msra.mxu1 %v3325_v14  ;;  %v318_v13 = vadd.f32 %v3356_v12, %v2449_v24  ;;  %v2938_v12 = vld [vmem:[#allocation3 + $0xb8] sm:$0xff] }
 0x41a   :  { %1175 = vmatprep.subr.mxu0 %v3326_v16  ;;  %1246 = vmatprep.subr.mxu1 %v3327_v17 }
 0x41b   :  { %1176 = vmatpush1.msra.mxu0 %v3328_v18  ;;  %1247 = vmatpush1.msra.mxu1 %v3329_v19 }
 0x41c   :  { %1177 = vmatprep.subr.mxu0 %v3330_v20  ;;  %1248 = vmatprep.subr.mxu1 %v3331_v21 }
 0x41d   :  { %1178 = vmatpush1.msra.mxu0 %v3332_v22  ;;  %1249 = vmatpush1.msra.mxu1 %v3333_v23 }
 0x41e   :  { %1179 = vmatprep.subr.mxu0 %v3334_v25  ;;  %1250 = vmatprep.subr.mxu1 %v3335_v26 }
 0x41f   :  { %1180 = vmatpush1.msra.mxu0 %v3336_v27  ;;  %1251 = vmatpush1.msra.mxu1 %v3337_v28 }
 0x420   :  { %1181 = vmatprep.subr.mxu0 %v3338_v29  ;;  %1252 = vmatprep.subr.mxu1 %v3339_v30 }
 0x421   :  { %1182 = vmatpush1.msra.mxu0 %v3340_v31  ;;  %1215 = vmatprep.mubr.f32.mxu0 %v3341_v32 }
 0x422   :  { %1253 = vmatpush1.msra.mxu1 %v3342_v34  ;;  %1286 = vmatprep.mubr.f32.mxu1 %v3341_v32 }
 0x423   :  { %1325 = vmatprep.subr.mxu0 %v2858_v43  ;;  %1396 = vmatprep.subr.mxu1 %v2861_v44 }
 0x4c2   :  { %v1043_v47 = vpop.f32.mrf.mxu0  ;;  %v1114_v54 = vpop.f32.mrf.mxu1 }
 0x4c3   :  { %v1123_v48 = vadd.f32 %v1043_v47, %v205_v46  ;;  %v1125_v14 = vadd.f32 %v1114_v54, %v318_v13  ;;  %v3359_v46 = vld [vmem:[#allocation13_spill] sm:$0xff]  ;;  %v2902_v47 = vld [vmem:[#allocation3 + $0x118] sm:$0xff]  ;;  %v2920_v54 = vld [vmem:[#allocation3 + $0xf0] sm:$0xff] }
 0x4c4   :  { %v1045_v49 = vpop.f32.mrf.mxu0  ;;  %v1116_v57 = vpop.f32.mrf.mxu1  ;;  %v2941_v13 = vld [vmem:[#allocation3 + $0xa0] sm:$0xff] }
 0x4c5   :  { %v1800_v50 = vmul.f32 -1.442695, %v1123_v48  ;;  %v1124_v53 = vadd.f32 %v1045_v49, %v3354_v52  ;;  %v1126_v8 = vadd.f32 %v1116_v57, %v320_v3  ;;  %v2905_v48 = vld [vmem:[#allocation3 + $0x100] sm:$0xff]  ;;  %v2908_v49 = vld [vmem:[#allocation3 + $0x110] sm:$0xff]  ;;  %v2914_v52 = vld [vmem:[#allocation3 + $0xf8] sm:$0xff] }
 0x4c6   :  { %v2926_v57 = vld [vmem:[#allocation3 + $0xd8] sm:$0xff]  ;;  %v2932_v3 = vld [vmem:[#allocation3 + $0xd0] sm:$0xff] }
 0x4c7   :  { %1933 = vpow2.f32 %v1800_v50  ;;  %v1801_v55 = vmul.f32 -1.442695, %v1124_v53  ;;  %v1802_v16 = vmul.f32 -1.442695, %v1126_v8  ;;  %v2911_v50 = vld [vmem:[#allocation3 + $0xe8] sm:$0xff]  ;;  %v2917_v53 = vld [vmem:[#allocation3 + $0xe0] sm:$0xff] }
 0x4c8   :  { %v2935_v8 = vld [vmem:[#allocation3 + $0xa8] sm:$0xff] }
 0x4c9   :  { %1935 = vpow2.f32 %v1801_v55  ;;  %v2923_v55 = vld [vmem:[#allocation3 + $0xc8] sm:$0xff] }
 0x4ca   :  { %1937 = vtanh.f32 %v1125_v14  ;;  %v2944_v14 = vld [vmem:[#allocation3 + $0xb0] sm:$0xff] }
 0x4cb   :  { %1939 = vpow2.f32 %v1802_v16  ;;  %v2947_v16 = vld [vmem:[#allocation3 + $0x88] sm:$0xff] }
 0x4d4   :  { %v1934_v17 = vpop.eup %1933 }
 0x4d5   :  { %v1130_v18 = vadd.f32 1.0, %v1934_v17  ;;  %v2950_v17 = vld [vmem:[#allocation3 + $0x98] sm:$0xff] }
 0x4d6   :  { %v1936_v19 = vpop.eup %1935  ;;  %3360 = vst [vmem:[#allocation12_spill] sm:$0xff] %v2950_v17 }
 0x4d7   :  { %1941 = vrcp.f32 %v1130_v18  ;;  %v1136_v20 = vadd.f32 1.0, %v1936_v19  ;;  %v1938_v21 = vpop.eup %1937  ;;  %v2953_v18 = vld [vmem:[#allocation3 + $0x80] sm:$0xff]  ;;  %v2956_v19 = vld [vmem:[#allocation3 + $0x90] sm:$0xff] }
 0x4d8   :  { %v1940_v22 = vpop.eup %1939  ;;  %3361 = vst [vmem:[#allocation35_spill] sm:$0xff] %v2953_v18  ;;  %3362 = vst [vmem:[#allocation37_spill] sm:$0xff] %v2956_v19 }
 0x4d9   :  { %1943 = vrcp.f32 %v1136_v20  ;;  %v1143_v27 = vadd.f32 1.0, %v1940_v22  ;;  %v2959_v20 = vld [vmem:[#allocation3 + $0x68] sm:$0xff]  ;;  %v2965_v22 = vld [vmem:[#allocation3 + $0x60] sm:$0xff] }
 0x4da   :  { %3363 = vst [vmem:[#allocation47_spill] sm:$0xff] %v2959_v20  ;;  %3365 = vst [vmem:[#allocation14_spill] sm:$0xff] %v2965_v22 }
 0x4db   :  { %1945 = vrcp.f32 %v1143_v27  ;;  %v2977_v27 = vld [vmem:[#allocation3 + $0x40] sm:$0xff] }
 0x4dc   :  { %3369 = vst [vmem:[#allocation19_spill] sm:$0xff] %v2977_v27 }
 0x4e4   :  { %v1942_v23 = vpop.eup %1941 }
 0x4e5   :  { %v1147_v25 = vmul.f32 %v1942_v23, %v1938_v21  ;;  %v2962_v21 = vld [vmem:[#allocation3 + $0x78] sm:$0xff]  ;;  %v2968_v23 = vld [vmem:[#allocation3 + $0x70] sm:$0xff] }
 0x4e6   :  { %v1944_v26 = vpop.eup %1943  ;;  %3364 = vst [vmem:[#allocation46_spill] sm:$0xff] %v2962_v21  ;;  %3366 = vst [vmem:[#allocation15_spill] sm:$0xff] %v2968_v23 }
 0x4e7   :  { %v1146_v28 = vmul.f32 %v1944_v26, %v2737_v51  ;;  %v3357_v51 = vld [vmem:[#allocation34_spill] sm:$0xff]  ;;  %v2974_v26 = vld [vmem:[#allocation3 + $0x58] sm:$0xff] }
 0x4e8   :  { %v1946_v30 = vpop.eup %1945  ;;  %3368 = vst [vmem:[#allocation16_spill] sm:$0xff] %v2974_v26 }
 0x4e9   :  { %v2872_v29 = vadd.f32 %v1147_v25, %v1146_v28  ;;  %v2971_v25 = vld [vmem:[#allocation3 + $0x48] sm:$0xff]  ;;  %v2980_v28 = vld [vmem:[#allocation3 + $0x50] sm:$0xff] }
 0x4ea   :  { %3367 = vst [vmem:[#allocation17_spill] sm:$0xff] %v2971_v25  ;;  %3370 = vst [vmem:[#allocation18_spill] sm:$0xff] %v2980_v28 }
 0x4eb   :  { %1947 = vtanh.f32 %v2872_v29 }
 0x4f8   :  { %v1948_v31 = vpop.eup %1947 }
 0x4f9   :  { %v1150_v34 = vmul.f32 %v1948_v31, %v1946_v30  ;;  %v2983_v30 = vld [vmem:[#allocation3 + $0x28] sm:$0xff]  ;;  %v2986_v31 = vld [vmem:[#allocation3 + $0x38] sm:$0xff] }
 0x4fa   :  { %3371 = vst [vmem:[#allocation21_spill] sm:$0xff] %v2983_v30  ;;  %3372 = vst [vmem:[#allocation20_spill] sm:$0xff] %v2986_v31 }
 0x4fb   :  { %1216 = vmatmul.mubr.f32.vlgmr.msra.gmra.mxu0 %v1150_v34  ;;  %1287 = vmatmul.mubr.f32.vlgmr.msra.gmra.mxu1 %v1150_v34  ;;  %v2989_v34 = vld [vmem:[#allocation3 + $0x20] sm:$0xff] }
 0x4fc   :  { %1326 = vmatpush1.msra.mxu0 %v2740_v61  ;;  %1397 = vmatpush1.msra.mxu1 %v2743_v1  ;;  %3373 = vst [vmem:[#allocation22_spill] sm:$0xff] %v2989_v34 }
 0x4fd   :  { %1327 = vmatprep.subr.mxu0 %v2746_v9  ;;  %1398 = vmatprep.subr.mxu1 %v2749_v6 }
 0x4fe   :  { %1328 = vmatpush1.msra.mxu0 %v2752_v11  ;;  %1399 = vmatpush1.msra.mxu1 %v2755_v15 }
 0x4ff   :  { %1329 = vmatprep.subr.mxu0 %v2758_v59  ;;  %1400 = vmatprep.subr.mxu1 %v2761_v0 }
 0x500   :  { %1330 = vmatpush1.msra.mxu0 %v2764_v10  ;;  %1401 = vmatpush1.msra.mxu1 %v2767_v62 }
 0x501   :  { %1331 = vmatprep.subr.mxu0 %v2770_v4  ;;  %1402 = vmatprep.subr.mxu1 %v2773_v60 }
 0x502   :  { %1332 = vmatpush1.msra.mxu0 %v2776_v5  ;;  %1403 = vmatpush1.msra.mxu1 %v2779_v7 }
 0x503   :  { %1333 = vmatprep.subr.mxu0 %v2782_v35  ;;  %1404 = vmatprep.subr.mxu1 %v2785_v36 }
 0x504   :  { %1334 = vmatpush1.msra.mxu0 %v2788_v38  ;;  %1405 = vmatpush1.msra.mxu1 %v2791_v39 }
 0x505   :  { %1335 = vmatprep.subr.mxu0 %v3357_v51  ;;  %1406 = vmatprep.subr.mxu1 %v3358_v45 }
 0x506   :  { %1336 = vmatpush1.msra.mxu0 %v3359_v46  ;;  %1407 = vmatpush1.msra.mxu1 %v2803_v42 }
 0x507   :  { %1337 = vmatprep.subr.mxu0 %v2806_v33  ;;  %1408 = vmatprep.subr.mxu1 %v2809_v63 }
 0x508   :  { %1338 = vmatpush1.msra.mxu0 %v2812_v40  ;;  %1409 = vmatpush1.msra.mxu1 %v2815_v41 }
 0x509   :  { %1339 = vmatprep.subr.mxu0 %v2818_v2  ;;  %1410 = vmatprep.subr.mxu1 %v2902_v47 }
 0x50a   :  { %1340 = vmatpush1.msra.mxu0 %v2905_v48  ;;  %1411 = vmatpush1.msra.mxu1 %v2908_v49 }
 0x50b   :  { %1341 = vmatprep.subr.mxu0 %v2911_v50  ;;  %1412 = vmatprep.subr.mxu1 %v2914_v52 }
 0x50c   :  { %1342 = vmatpush1.msra.mxu0 %v2917_v53  ;;  %1413 = vmatpush1.msra.mxu1 %v2920_v54 }
 0x50d   :  { %1343 = vmatprep.subr.mxu0 %v2923_v55  ;;  %1414 = vmatprep.subr.mxu1 %v2926_v57 }
 0x50e   :  { %1344 = vmatpush1.msra.mxu0 %v2929_v56  ;;  %1415 = vmatpush1.msra.mxu1 %v2932_v3 }
 0x50f   :  { %1345 = vmatprep.subr.mxu0 %v2935_v8  ;;  %1416 = vmatprep.subr.mxu1 %v2938_v12 }
 0x510   :  { %1346 = vmatpush1.msra.mxu0 %v2941_v13  ;;  %1417 = vmatpush1.msra.mxu1 %v2944_v14 }
 0x511   :  { %1347 = vmatprep.subr.mxu0 %v2947_v16  ;;  %1418 = vmatprep.subr.mxu1 %v2950_v17 }
 0x512   :  { %1348 = vmatpush1.msra.mxu0 %v2953_v18  ;;  %1419 = vmatpush1.msra.mxu1 %v2956_v19 }
 0x513   :  { %1349 = vmatprep.subr.mxu0 %v2959_v20  ;;  %1420 = vmatprep.subr.mxu1 %v2962_v21 }
 0x514   :  { %1350 = vmatpush1.msra.mxu0 %v2965_v22  ;;  %1421 = vmatpush1.msra.mxu1 %v2968_v23 }
 0x515   :  { %1351 = vmatprep.subr.mxu0 %v2971_v25  ;;  %1422 = vmatprep.subr.mxu1 %v2974_v26  ;;  %v2992_v26 = vld [vmem:[#allocation3 + $0x30] sm:$0xff] }
 0x516   :  { %1352 = vmatpush1.msra.mxu0 %v2977_v27  ;;  %1423 = vmatpush1.msra.mxu1 %v2980_v28  ;;  %3374 = vst [vmem:[#allocation23_spill] sm:$0xff] %v2992_v26  ;;  %v2995_v27 = vld [vmem:[#allocation3 + $0x8] sm:$0xff]  ;;  %v2998_v28 = vld [vmem:[#allocation3 + $0x18] sm:$0xff] }
 0x517   :  { %1353 = vmatprep.subr.mxu0 %v2983_v30  ;;  %1424 = vmatprep.subr.mxu1 %v2986_v31  ;;  %3375 = vst [vmem:[#allocation25_spill] sm:$0xff] %v2995_v27  ;;  %3376 = vst [vmem:[#allocation24_spill] sm:$0xff] %v2998_v28  ;;  %v3001_v30 = vld [vmem:[#allocation3] sm:$0xff]  ;;  %v3005_v31 = vld [vmem:[#allocation3 + $0x10] sm:$0xff] }
 0x518   :  { %1354 = vmatpush1.msra.mxu0 %v2989_v34  ;;  %1425 = vmatpush1.msra.mxu1 %v2992_v26  ;;  %3377 = vst [vmem:[#allocation27_spill] sm:$0xff] %v3001_v30  ;;  %3378 = vst [vmem:[#allocation26_spill] sm:$0xff] %v3005_v31 }
 0x519   :  { %1355 = vmatprep.subr.mxu0 %v2995_v27  ;;  %1426 = vmatprep.subr.mxu1 %v2998_v28  ;;  %v3379_v27 = vld [vmem:[#allocation42_spill] sm:$0xff] }
 0x51a   :  { %1356 = vmatpush1.msra.mxu0 %v3001_v30  ;;  %1389 = vmatprep.mubr.f32.mxu0 %v3341_v32  ;;  %v211_v26 = vadd.f32 %v3379_v27, %v3345_v37  ;;  %v3380_v30 = vld [vmem:[#allocation43_spill] sm:$0xff] }
 0x51b   :  { %1427 = vmatpush1.msra.mxu1 %v3005_v31  ;;  %1460 = vmatprep.mubr.f32.mxu1 %v3341_v32  ;;  %v3381_v32 = vld [vmem:[#allocation53_spill] sm:$0xff] }
 0x51c   :  { %1499 = vmatprep.subr.mxu0 %v2858_v43  ;;  %1570 = vmatprep.subr.mxu1 %v2861_v44  ;;  %v326_v19 = vadd.f32 %v3381_v32, %v3292_v58  ;;  %v3382_v44 = vld [vmem:[#allocation52_spill] sm:$0xff] }
 0x51d   :  { %v324_v18 = vadd.f32 %v3382_v44, %v2449_v24 }
 0x5bb   :  { %v1217_v28 = vpop.f32.mrf.mxu0  ;;  %v1288_v21 = vpop.f32.mrf.mxu1 }
 0x5bc   :  { %v1297_v34 = vadd.f32 %v1217_v28, %v211_v26  ;;  %v1299_v17 = vadd.f32 %v1288_v21, %v324_v18 }
 0x5bd   :  { %v1219_v25 = vpop.f32.mrf.mxu0  ;;  %v1290_v31 = vpop.f32.mrf.mxu1 }
 0x5be   :  { %v1803_v23 = vmul.f32 -1.442695, %v1297_v34  ;;  %v1298_v22 = vadd.f32 %v1219_v25, %v3380_v30  ;;  %v1300_v43 = vadd.f32 %v1290_v31, %v326_v19 }
 0x5c0   :  { %1949 = vpow2.f32 %v1803_v23  ;;  %v1804_v20 = vmul.f32 -1.442695, %v1298_v22  ;;  %v1805_v27 = vmul.f32 -1.442695, %v1300_v43 }
 0x5c2   :  { %1951 = vpow2.f32 %v1804_v20 }
 0x5c3   :  { %1953 = vtanh.f32 %v1299_v17 }
 0x5c4   :  { %1955 = vpow2.f32 %v1805_v27 }
 0x5cd   :  { %v1950_v37 = vpop.eup %1949 }
 0x5ce   :  { %v1304_v26 = vadd.f32 1.0, %v1950_v37 }
 0x5cf   :  { %v1952_v28 = vpop.eup %1951 }
 0x5d0   :  { %1957 = vrcp.f32 %v1304_v26  ;;  %v1310_v23 = vadd.f32 1.0, %v1952_v28  ;;  %v1954_v22 = vpop.eup %1953 }
 0x5d1   :  { %v1956_v20 = vpop.eup %1955 }
 0x5d2   :  { %1959 = vrcp.f32 %v1310_v23  ;;  %v1317_v32 = vadd.f32 1.0, %v1956_v20 }
 0x5d4   :  { %1961 = vrcp.f32 %v1317_v32  ;;  %v1686_v32 = vld [vmem:[#allocation5 + $0x68] sm:$0xff] }
 0x5dd   :  { %v1958_v25 = vpop.eup %1957 }
 0x5de   :  { %v1321_v30 = vmul.f32 %v1958_v25, %v1954_v22 }
 0x5df   :  { %v1960_v34 = vpop.eup %1959 }
 0x5e0   :  { %v1320_v19 = vmul.f32 %v1960_v34, %v2872_v29  ;;  %v1687_v34 = vld [vmem:[#allocation5 + $0x70] sm:$0xff] }
 0x5e1   :  { %v1962_v37 = vpop.eup %1961 }
 0x5e2   :  { %v3019_v31 = vadd.f32 %v1321_v30, %v1320_v19  ;;  %v1688_v30 = vld [vmem:[#allocation5 + $0x78] sm:$0xff]  ;;  %v1685_v19 = vld [vmem:[#allocation5 + $0x60] sm:$0xff] }
 0x5e4   :  { %1963 = vtanh.f32 %v3019_v31 }
 0x5f1   :  { %v1964_v17 = vpop.eup %1963 }
 0x5f2   :  { %v1324_v18 = vmul.f32 %v1964_v17, %v1962_v37  ;;  %v1683_v37 = vld [vmem:[#allocation5 + $0x50] sm:$0xff]  ;;  %v1682_v17 = vld [vmem:[#allocation5 + $0x48] sm:$0xff] }
 0x5f4   :  { %1390 = vmatmul.mubr.f32.vlgmr.msra.gmra.mxu0 %v1324_v18  ;;  %1461 = vmatmul.mubr.f32.vlgmr.msra.gmra.mxu1 %v1324_v18  ;;  %v1681_v18 = vld [vmem:[#allocation5 + $0x40] sm:$0xff] }
 0x5f5   :  { %1500 = vmatpush1.msra.mxu0 %v2740_v61  ;;  %1571 = vmatpush1.msra.mxu1 %v2743_v1  ;;  %v3383_v61 = vld [vmem:[#allocation12_spill] sm:$0xff]  ;;  %v3384_v1 = vld [vmem:[#allocation35_spill] sm:$0xff] }
 0x5f6   :  { %1501 = vmatprep.subr.mxu0 %v2746_v9  ;;  %1572 = vmatprep.subr.mxu1 %v2749_v6  ;;  %v3385_v9 = vld [vmem:[#allocation37_spill] sm:$0xff]  ;;  %v3386_v6 = vld [vmem:[#allocation47_spill] sm:$0xff] }
 0x5f7   :  { %1502 = vmatpush1.msra.mxu0 %v2752_v11  ;;  %1573 = vmatpush1.msra.mxu1 %v2755_v15  ;;  %v3387_v11 = vld [vmem:[#allocation46_spill] sm:$0xff] }
 0x5f8   :  { %1503 = vmatprep.subr.mxu0 %v2758_v59  ;;  %1574 = vmatprep.subr.mxu1 %v2761_v0  ;;  %v3388_v15 = vld [vmem:[#allocation14_spill] sm:$0xff]  ;;  %v3389_v59 = vld [vmem:[#allocation15_spill] sm:$0xff]  ;;  %v3390_v0 = vld [vmem:[#allocation17_spill] sm:$0xff] }
 0x5f9   :  { %1504 = vmatpush1.msra.mxu0 %v2764_v10  ;;  %1575 = vmatpush1.msra.mxu1 %v2767_v62  ;;  %v3391_v10 = vld [vmem:[#allocation16_spill] sm:$0xff]  ;;  %v3392_v62 = vld [vmem:[#allocation19_spill] sm:$0xff] }
 0x5fa   :  { %1505 = vmatprep.subr.mxu0 %v2770_v4  ;;  %1576 = vmatprep.subr.mxu1 %v2773_v60  ;;  %v3393_v4 = vld [vmem:[#allocation18_spill] sm:$0xff]  ;;  %v3394_v60 = vld [vmem:[#allocation21_spill] sm:$0xff] }
 0x5fb   :  { %1506 = vmatpush1.msra.mxu0 %v2776_v5  ;;  %1577 = vmatpush1.msra.mxu1 %v2779_v7  ;;  %v3395_v5 = vld [vmem:[#allocation20_spill] sm:$0xff]  ;;  %v3396_v7 = vld [vmem:[#allocation22_spill] sm:$0xff] }
 0x5fc   :  { %1507 = vmatprep.subr.mxu0 %v2782_v35  ;;  %1578 = vmatprep.subr.mxu1 %v2785_v36  ;;  %v3397_v35 = vld [vmem:[#allocation23_spill] sm:$0xff]  ;;  %v3398_v36 = vld [vmem:[#allocation25_spill] sm:$0xff] }
 0x5fd   :  { %1508 = vmatpush1.msra.mxu0 %v2788_v38  ;;  %1579 = vmatpush1.msra.mxu1 %v2791_v39  ;;  %v3399_v38 = vld [vmem:[#allocation24_spill] sm:$0xff]  ;;  %v3400_v39 = vld [vmem:[#allocation27_spill] sm:$0xff] }
 0x5fe   :  { %1509 = vmatprep.subr.mxu0 %v3357_v51  ;;  %1580 = vmatprep.subr.mxu1 %v3358_v45 }
 0x5ff   :  { %1510 = vmatpush1.msra.mxu0 %v3359_v46  ;;  %1581 = vmatpush1.msra.mxu1 %v2803_v42  ;;  %v3404_v42 = vld [vmem:[#allocation44_spill] sm:$0xff]  ;;  %v3405_v46 = vld [vmem:[#allocation45_spill] sm:$0xff] }
 0x600   :  { %1511 = vmatprep.subr.mxu0 %v2806_v33  ;;  %1582 = vmatprep.subr.mxu1 %v2809_v63 }
 0x601   :  { %1512 = vmatpush1.msra.mxu0 %v2812_v40  ;;  %1583 = vmatpush1.msra.mxu1 %v2815_v41  ;;  %v3401_v40 = vmov 0.0   ;;  %v3402_v41 = vld [vmem:[#allocation26_spill] sm:$0xff] }
 0x602   :  { %1513 = vmatprep.subr.mxu0 %v2818_v2  ;;  %1584 = vmatprep.subr.mxu1 %v2902_v47  ;;  %v3403_v2 = vld [vmem:[#allocation33_spill] sm:$0xff] }
 0x603   :  { %1514 = vmatpush1.msra.mxu0 %v2905_v48  ;;  %1585 = vmatpush1.msra.mxu1 %v2908_v49  ;;  %v217_v33 = vadd.f32 %v3404_v42, %v3403_v2 }
 0x604   :  { %1515 = vmatprep.subr.mxu0 %v2911_v50  ;;  %1586 = vmatprep.subr.mxu1 %v2914_v52  ;;  %v3406_v52 = vld [vmem:[#allocation55_spill] sm:$0xff] }
 0x605   :  { %1516 = vmatpush1.msra.mxu0 %v2917_v53  ;;  %1587 = vmatpush1.msra.mxu1 %v2920_v54  ;;  %v332_v53 = vadd.f32 %v3406_v52, %v3292_v58 }
 0x606   :  { %1517 = vmatprep.subr.mxu0 %v2923_v55  ;;  %1588 = vmatprep.subr.mxu1 %v2926_v57  ;;  %v3407_v55 = vld [vmem:[#allocation54_spill] sm:$0xff] }
 0x607   :  { %1518 = vmatpush1.msra.mxu0 %v2929_v56  ;;  %1589 = vmatpush1.msra.mxu1 %v2932_v3  ;;  %v330_v57 = vadd.f32 %v3407_v55, %v2449_v24 }
 0x608   :  { %1519 = vmatprep.subr.mxu0 %v2935_v8  ;;  %1590 = vmatprep.subr.mxu1 %v2938_v12 }
 0x609   :  { %1520 = vmatpush1.msra.mxu0 %v2941_v13  ;;  %1591 = vmatpush1.msra.mxu1 %v2944_v14 }
 0x60a   :  { %1521 = vmatprep.subr.mxu0 %v2947_v16  ;;  %1592 = vmatprep.subr.mxu1 %v3383_v61  ;;  %v1680_v61 = vld [vmem:[#allocation5 + $0x38] sm:$0xff] }
 0x60b   :  { %1522 = vmatpush1.msra.mxu0 %v3384_v1  ;;  %1593 = vmatpush1.msra.mxu1 %v3385_v9  ;;  %v1679_v1 = vld [vmem:[#allocation5 + $0x30] sm:$0xff]  ;;  %v1678_v9 = vld [vmem:[#allocation5 + $0x28] sm:$0xff] }
 0x60c   :  { %1523 = vmatprep.subr.mxu0 %v3386_v6  ;;  %1594 = vmatprep.subr.mxu1 %v3387_v11  ;;  %v1677_v6 = vld [vmem:[#allocation5 + $0x20] sm:$0xff]  ;;  %v1676_v11 = vld [vmem:[#allocation5 + $0x18] sm:$0xff] }
 0x60d   :  { %1524 = vmatpush1.msra.mxu0 %v3388_v15  ;;  %1595 = vmatpush1.msra.mxu1 %v3389_v59  ;;  %v1675_v15 = vld [vmem:[#allocation5 + $0x10] sm:$0xff]  ;;  %v1674_v59 = vld [vmem:[#allocation5 + $0x8] sm:$0xff] }
 0x60e   :  { %1525 = vmatprep.subr.mxu0 %v3390_v0  ;;  %1596 = vmatprep.subr.mxu1 %v3391_v10  ;;  %v1673_v0 = vld [vmem:[#allocation5] sm:$0xff]  ;;  %v3408_v10 = vld [vmem:[#allocation56_spill] sm:$0xff] }
 0x60f   :  { %1526 = vmatpush1.msra.mxu0 %v3392_v62  ;;  %1597 = vmatpush1.msra.mxu1 %v3393_v4  ;;  %v223_v62 = vadd.f32 %v3408_v10, %v3403_v2 }
 0x610   :  { %1527 = vmatprep.subr.mxu0 %v3394_v60  ;;  %1598 = vmatprep.subr.mxu1 %v3395_v5  ;;  %v3409_v60 = vld [vmem:[#allocation36_spill] sm:$0xff]  ;;  %v3410_v5 = vld [vmem:[#allocation58_spill] sm:$0xff] }
 0x611   :  { %1528 = vmatpush1.msra.mxu0 %v3396_v7  ;;  %1599 = vmatpush1.msra.mxu1 %v3397_v35  ;;  %v225_v7 = vadd.f32 %v3410_v5, %v3409_v60 }
 0x612   :  { %1529 = vmatprep.subr.mxu0 %v3398_v36  ;;  %1600 = vmatprep.subr.mxu1 %v3399_v38 }
 0x613   :  { %1530 = vmatpush1.msra.mxu0 %v3400_v39  ;;  %1563 = vmatprep.mubr.f32.mxu0 %v3401_v40 }
 0x614   :  { %1601 = vmatpush1.msra.mxu1 %v3402_v41  ;;  %1634 = vmatprep.mubr.f32.mxu1 %v3401_v40 }
 0x615   :  { %1830 = vmatprep.subr.mxu0 %v3401_v40 }
 0x6b4   :  { %v1391_v63 = vpop.f32.mrf.mxu0  ;;  %v1462_v48 = vpop.f32.mrf.mxu1 }
 0x6b5   :  { %v1471_v29 = vadd.f32 %v1391_v63, %v217_v33  ;;  %v1473_v56 = vadd.f32 %v1462_v48, %v330_v57  ;;  %v3411_v63 = vld [vmem:[#allocation59_spill] sm:$0xff] }
 0x6b6   :  { %v1393_v51 = vpop.f32.mrf.mxu0  ;;  %v1464_v50 = vpop.f32.mrf.mxu1 }
 0x6b7   :  { %v1806_v45 = vmul.f32 -1.442695, %v1471_v29  ;;  %v1472_v47 = vadd.f32 %v1393_v51, %v3405_v46  ;;  %v1474_v54 = vadd.f32 %v1464_v50, %v332_v53  ;;  %v3412_v51 = vld [vmem:[#allocation57_spill] sm:$0xff] }
 0x6b8   :  { %v336_v2 = vadd.f32 %v3412_v51, %v2449_v24 }
 0x6b9   :  { %1965 = vpow2.f32 %v1806_v45  ;;  %v1807_v49 = vmul.f32 -1.442695, %v1472_v47  ;;  %v1808_v3 = vmul.f32 -1.442695, %v1474_v54 }
 0x6bb   :  { %1967 = vpow2.f32 %v1807_v49 }
 0x6bc   :  { %1969 = vtanh.f32 %v1473_v56 }
 0x6bd   :  { %1971 = vpow2.f32 %v1808_v3 }
 0x6c6   :  { %v1966_v8 = vpop.eup %1965 }
 0x6c7   :  { %v1478_v12 = vadd.f32 1.0, %v1966_v8 }
 0x6c8   :  { %v1968_v13 = vpop.eup %1967 }
 0x6c9   :  { %1973 = vrcp.f32 %v1478_v12  ;;  %v1484_v14 = vadd.f32 1.0, %v1968_v13  ;;  %v1970_v16 = vpop.eup %1969  ;;  %v1812_v13 = vld [vmem:[%s3134_s5] ss:$0 sm:$0xff] }
 0x6ca   :  { %v1972_v21 = vpop.eup %1971 }
 0x6cb   :  { %1975 = vrcp.f32 %v1484_v14  ;;  %v1491_v26 = vadd.f32 1.0, %v1972_v21 }
 0x6cd   :  { %1977 = vrcp.f32 %v1491_v26 }
 0x6d6   :  { %v1974_v43 = vpop.eup %1973 }
 0x6d7   :  { %v1495_v44 = vmul.f32 %v1974_v43, %v1970_v16 }
 0x6d8   :  { %v1976_v27 = vpop.eup %1975 }
 0x6d9   :  { %v1494_v28 = vmul.f32 %v1976_v27, %v3019_v31  ;;  %v1684_v31 = vld [vmem:[#allocation5 + $0x58] sm:$0xff] }
 0x6da   :  { %v1978_v22 = vpop.eup %1977 }
 0x6db   :  { %v3095_v23 = vadd.f32 %v1495_v44, %v1494_v28 }
 0x6dd   :  { %1979 = vtanh.f32 %v3095_v23 }
 0x6ea   :  { %v1980_v20 = vpop.eup %1979 }
 0x6eb   :  { %v1498_v25 = vmul.f32 %v1980_v20, %v1978_v22 }
 0x6ed   :  { %1564 = vmatmul.mubr.f32.vlgmr.msra.gmra.mxu0 %v1498_v25  ;;  %1635 = vmatmul.mubr.f32.vlgmr.msra.gmra.mxu1 %v1498_v25 }
 0x6ee   :  { %1831 = vmatpush3.msra.mxu0 %v1688_v30  ;;  %1862 = vmatprep.mubr.msk.f32.mxu0 %vm2112_vm1, %v3401_v40 }
 0x6ef   :  { %1832 = vmatprep.subr.mxu0 %v3401_v40 }
 0x6f0   :  { %1833 = vmatpush3.msra.mxu0 %v1687_v34 }
 0x6f1   :  { %1834 = vmatprep.subr.mxu0 %v3401_v40 }
 0x6f2   :  { %1835 = vmatpush3.msra.mxu0 %v1686_v32 }
 0x6f3   :  { %1836 = vmatprep.subr.mxu0 %v3401_v40 }
 0x6f4   :  { %1837 = vmatpush3.msra.mxu0 %v1685_v19 }
 0x6f5   :  { %1838 = vmatprep.subr.mxu0 %v3401_v40 }
 0x6f6   :  { %1839 = vmatpush3.msra.mxu0 %v1684_v31 }
 0x6f7   :  { %1840 = vmatprep.subr.mxu0 %v3401_v40 }
 0x6f8   :  { %1841 = vmatpush3.msra.mxu0 %v1683_v37 }
 0x6f9   :  { %1842 = vmatprep.subr.mxu0 %v3401_v40 }
 0x6fa   :  { %1843 = vmatpush3.msra.mxu0 %v1682_v17 }
 0x6fb   :  { %1844 = vmatprep.subr.mxu0 %v3401_v40 }
 0x6fc   :  { %1845 = vmatpush3.msra.mxu0 %v1681_v18 }
 0x6fd   :  { %1846 = vmatprep.subr.mxu0 %v3401_v40 }
 0x6fe   :  { %1847 = vmatpush3.msra.mxu0 %v1680_v61 }
 0x6ff   :  { %1848 = vmatprep.subr.mxu0 %v3401_v40 }
 0x700   :  { %1849 = vmatpush3.msra.mxu0 %v1679_v1 }
 0x701   :  { %1850 = vmatprep.subr.mxu0 %v3401_v40 }
 0x702   :  { %1851 = vmatpush3.msra.mxu0 %v1678_v9 }
 0x703   :  { %1852 = vmatprep.subr.mxu0 %v3401_v40 }
 0x704   :  { %1853 = vmatpush3.msra.mxu0 %v1677_v6 }
 0x705   :  { %1854 = vmatprep.subr.mxu0 %v3401_v40 }
 0x706   :  { %1855 = vmatpush3.msra.mxu0 %v1676_v11 }
 0x707   :  { %1856 = vmatprep.subr.mxu0 %v3401_v40 }
 0x708   :  { %1857 = vmatpush3.msra.mxu0 %v1675_v15 }
 0x709   :  { %1858 = vmatprep.subr.mxu0 %v3401_v40 }
 0x70a   :  { %1859 = vmatpush3.msra.mxu0 %v1674_v59 }
 0x70b   :  { %1860 = vmatprep.subr.mxu0 %v3401_v40  ;;  %v338_v40 = vadd.f32 %v3411_v63, %v3292_v58 }
 0x70c   :  { %1861 = vmatpush3.msra.mxu0 %v1673_v0 }
 0x7ad   :  { %v1565_v4 = vpop.f32.mrf.mxu0  ;;  %v1636_v41 = vpop.f32.mrf.mxu1 }
 0x7ae   :  { %v1645_v35 = vadd.f32 %v1565_v4, %v223_v62  ;;  %v1647_v45 = vadd.f32 %v1636_v41, %v336_v2 }
 0x7af   :  { %v1567_v36 = vpop.f32.mrf.mxu0  ;;  %v1638_v33 = vpop.f32.mrf.mxu1 }
 0x7b0   :  { %v1809_v38 = vmul.f32 -1.442695, %v1645_v35  ;;  %v1646_v39 = vadd.f32 %v1567_v36, %v225_v7  ;;  %v1648_v29 = vadd.f32 %v1638_v33, %v338_v40 }
 0x7b2   :  { %1981 = vpow2.f32 %v1809_v38  ;;  %v1810_v42 = vmul.f32 -1.442695, %v1646_v39  ;;  %v1811_v46 = vmul.f32 -1.442695, %v1648_v29 }
 0x7b4   :  { %1983 = vpow2.f32 %v1810_v42 }
 0x7b5   :  { %1985 = vtanh.f32 %v1647_v45 }
 0x7b6   :  { %1987 = vpow2.f32 %v1811_v46 }
 0x7bf   :  { %v1982_v47 = vpop.eup %1981 }
 0x7c0   :  { %v1652_v48 = vadd.f32 1.0, %v1982_v47 }
 0x7c1   :  { %v1984_v49 = vpop.eup %1983 }
 0x7c2   :  { %1989 = vrcp.f32 %v1652_v48  ;;  %v1658_v50 = vadd.f32 1.0, %v1984_v49  ;;  %v1986_v52 = vpop.eup %1985 }
 0x7c3   :  { %v1988_v53 = vpop.eup %1987 }
 0x7c4   :  { %1991 = vrcp.f32 %v1658_v50  ;;  %v1665_v58 = vadd.f32 1.0, %v1988_v53 }
 0x7c6   :  { %1993 = vrcp.f32 %v1665_v58 }
 0x7cf   :  { %v1990_v54 = vpop.eup %1989 }
 0x7d0   :  { %v1669_v55 = vmul.f32 %v1990_v54, %v1986_v52 }
 0x7d1   :  { %v1992_v57 = vpop.eup %1991 }
 0x7d2   :  { %v1668_v56 = vmul.f32 %v1992_v57, %v3095_v23 }
 0x7d3   :  { %v1994_v24 = vpop.eup %1993 }
 0x7d4   :  { %v1670_v3 = vadd.f32 %v1669_v55, %v1668_v56 }
 0x7d6   :  { %1995 = vtanh.f32 %v1670_v3 }
 0x7e3   :  { %v1996_v8 = vpop.eup %1995 }
 0x7e4   :  { %v1672_v12 = vmul.f32 %v1996_v8, %v1994_v24 }
 0x7e6   :  { %1863 = vmatmul.mubr.f32.vlgmr.msra.gmra.mxu0 %v1672_v12 }
 0x8a6   :  { %v1762_v14 = vpop.f32.mrf.mxu0 }
 0x8a7   :  { %v1763_v16 = vadd.f32 %v1812_v13, %v1762_v14 }
 0x8a8   :  { %v1864_v21 = vpop.f32.mrf.mxu0 }
 0x8a9   :  { %1766 = vst [vmem:[%s3135_s6] sm:$0xff] %v1763_v16 }
 0x8aa   :  { %1771 = vsyncpa [#allocation4], 1 }
 0x8ab   :  { %1772 = vsyncpa [#allocation6], 1 }

</bundles_post_ra>
